<compile_context>
chip_gen: v7x
topology: tpu7x:2x2x1
jax: 0.10.0
libtpu: 0.0.40
codegen_flags: <defaults>
</compile_context>

<pallas_src>
import jax
import jax.numpy as jnp
from jax import lax
from jax.experimental import pallas as pl
from jax.experimental.pallas import tpu as pltpu

IN_EPS = 1e-3   # InstanceNorm2d eps from the module
BN_EPS = 1e-5   # BatchNorm2d default eps


# ----------------------------------------------------------------------------
# Kernel
# ----------------------------------------------------------------------------
def pointcn_kernel(x_ref, w_ref, v_ref, smean_ref, sbc_ref, o_ref):
    f32 = jnp.float32
    bf16 = jnp.bfloat16
    Bt = smean_ref.shape[1]              # samples per grid step (lane segments)

    x = x_ref[...]                       # (C, Bt*S_pad) f32
    smean = smean_ref[...]               # (Bt*S_pad, Bt): masked one-hot / S_valid
    V = v_ref[...]                       # (C, 36) packed scale/shift/bias columns

    def seg_mean(h):                     # per-sample spatial mean, on the MXU
        return jnp.dot(h, smean, preferred_element_type=f32)          # (C, Bt)

    if Bt > 1:
        sbc = sbc_ref[...]               # (Bt, Bt*S_pad) segment-broadcast one-hot
        def bcast(v):                    # (C, Bt) -> (C, Bt*S_pad)
            return jnp.dot(v, sbc, preferred_element_type=f32)
    else:
        def bcast(v):                    # (C, 1) broadcasts natively over lanes
            return v

    def vcol(i):                         # packed per-channel vector -> (C, 1)
        return V[:, i:i + 1]

    def conv(h, wi):                     # 1x1 conv: (C,C)@(C,N) bf16 MXU, f32 acc
        return jnp.dot(w_ref[wi], h.astype(bf16), preferred_element_type=f32)

    def block(h, i):
        """conv_init{i+1}: InstanceNorm(1e-3) -> fused eval BN -> ReLU -> 1x1 conv."""
        mu = seg_mean(h)
        hc = h - bcast(mu)
        var = seg_mean(hc * hc)                        # biased variance
        hn = hc * bcast(lax.rsqrt(var + IN_EPS))
        hn = hn * vcol(3 * i) + vcol(3 * i + 1)        # fused eval BatchNorm
        hn = jnp.maximum(hn, 0.0)                      # ReLU
        return conv(hn, i) + vcol(3 * i + 2)           # conv + bias

    def aff_conv_bn(h, j):
        """AFF conv -> fused BN (j: 0=local1, 1=local2, 2=global1, 3=global2)."""
        y = conv(h, 8 + j) + vcol(24 + 3 * j)
        return y * vcol(24 + 3 * j + 1) + vcol(24 + 3 * j + 2)

    # ---- first stack (conv_init1..4): block outputs live in disjoint channel
    #      bands, so summing the full-width maps IS the channel concatenation.
    h = block(x, 0)
    cat1 = h
    h = block(h, 1); cat1 = cat1 + h
    h = block(h, 2); cat1 = cat1 + h
    h = block(h, 3); cat1 = cat1 + h

    # ---- AFF ----
    xl = aff_conv_bn(jnp.maximum(aff_conv_bn(cat1, 0), 0.0), 1)       # (C, Bt*S_pad)
    pooled = seg_mean(cat1)                                           # AdaptiveAvgPool2d(1)
    xg = aff_conv_bn(jnp.maximum(aff_conv_bn(pooled, 2), 0.0), 3)     # (C, Bt)
    wei = jax.nn.sigmoid(xl + bcast(xg))
    mid = wei * cat1

    # ---- second stack (conv_init5..8) ----
    h = block(mid, 4)
    cat2 = h
    h = block(h, 5); cat2 = cat2 + h
    h = block(h, 6); cat2 = cat2 + h
    h = block(h, 7); cat2 = cat2 + h

    # shot_cut is None (out_channels == channels) -> residual is the input itself
    o_ref[...] = cat2 + x


# ----------------------------------------------------------------------------
# Parameter construction (deterministic, in-script, packed)
# ----------------------------------------------------------------------------
def make_pointcn_params(key, channels):
    """Packed params: (12, C, C) bf16 conv-weight stack + (C, 36) f32 column
    stack ([scale, shift, bias] x 8 blocks, [bias, scale, shift] x 4 AFF convs),
    each zero-embedded at its block's channel offsets inside the radix-4 cat."""
    C = channels
    q = C // 4                      # radix = 4; also AFF inter_channels (r = 4)

    def fused_bn(k, c):
        ks = jax.random.split(k, 4)
        gamma = jax.random.uniform(ks[0], (c,), minval=0.5, maxval=1.5)
        beta = jax.random.uniform(ks[1], (c,), minval=-0.1, maxval=0.1)
        rmean = 0.1 * jax.random.normal(ks[2], (c,))
        rvar = jax.random.uniform(ks[3], (c,), minval=0.5, maxval=1.5)
        scale = gamma / jnp.sqrt(rvar + BN_EPS)
        return scale, beta - rmean * scale

    def conv(k, ci, co):
        ks = jax.random.split(k, 2)
        bound = 1.0 / (ci ** 0.5)
        w = jax.random.uniform(ks[0], (co, ci), minval=-bound, maxval=bound)
        b = jax.random.uniform(ks[1], (co,), minval=-bound, maxval=bound)
        return w, b

    def embed_w(w, r0, c0):
        return jnp.zeros((C, C), jnp.float32).at[r0:r0 + w.shape[0],
                                                 c0:c0 + w.shape[1]].set(w)

    def embed_v(v, r0):
        return jnp.zeros((C,), jnp.float32).at[r0:r0 + v.shape[0]].set(v)

    # conv_init1..8: (c_in, c_out, input-channel offset, output-channel offset)
    blocks = [(C, q, 0, 0), (q, q, 0, q), (q, q, q, 2 * q), (q, q, 2 * q, 3 * q),
              (C, q, 0, 0), (q, q, 0, q), (q, q, q, 2 * q), (q, q, 2 * q, 3 * q)]
    keys = jax.random.split(key, 12)
    w_list, v_cols = [], []
    for i, (ci, co, ioff, ooff) in enumerate(blocks):
        kb, kc = jax.random.split(keys[i])
        s, t = fused_bn(kb, ci)            # IN has no affine params; BN acts on c_in
        w, b = conv(kc, ci, co)
        w_list.append(embed_w(w, ooff, ioff))
        v_cols += [embed_v(s, ioff), embed_v(t, ioff), embed_v(b, ooff)]

    # AFF(out_channels, r=4): local conv1/conv2, global conv1/conv2 (BN after conv)
    aff = [(C, q, 0, 0), (q, C, 0, 0), (C, q, 0, 0), (q, C, 0, 0)]
    for j, (ci, co, ioff, ooff) in enumerate(aff):
        kc, kb = jax.random.split(keys[8 + j])
        w, b = conv(kc, ci, co)
        s, t = fused_bn(kb, co)
        w_list.append(embed_w(w, ooff, ioff))
        v_cols += [embed_v(b, ooff), embed_v(s, ooff), embed_v(t, ooff)]

    wstack = jnp.stack(w_list, axis=0).astype(jnp.bfloat16)   # (12, C, C)
    vstack = jnp.stack(v_cols, axis=1).astype(jnp.float32)    # (C, 36)
    return wstack, vstack


# ----------------------------------------------------------------------------
# Wrapper
# ----------------------------------------------------------------------------
@jax.jit
def pointcn_forward(x_nchw, wstack, vstack):
    B, C, H, W = x_nchw.shape
    assert C % 4 == 0, "PointCN (radix=4) needs channels divisible by 4"
    S = H * W
    S_pad = pl.cdiv(S, 128) * 128               # lane-dense spatial size

    # Batch tile: fatten the matmul N dim, but keep >=2 grid steps when B >= 2
    # so both v7x TensorCores get work on the 'parallel' axis.
    LANE_TARGET = 1024
    Bt = max(1, min(B, LANE_TARGET // S_pad))
    if B >= 2 and pl.cdiv(B, Bt) < 2:
        Bt = max(1, B // 2)
    nsteps = pl.cdiv(B, Bt)
    B_pad = nsteps * Bt
    Lt = Bt * S_pad

    # (B, C, H, W) -> (C, B_pad * S_pad): batch samples laid along the lane axis.
    x = x_nchw.reshape(B, C, S).astype(jnp.float32)
    x = jnp.pad(x, ((0, B_pad - B), (0, 0), (0, S_pad - S)))
    x = jnp.transpose(x, (1, 0, 2)).reshape(C, B_pad * S_pad)

    # Segment matrices (compile-time constants): masked per-sample mean weights
    # and the segment-broadcast one-hot -> reductions/broadcasts become matmuls.
    lane = jnp.arange(Lt, dtype=jnp.int32)
    seg_id = lane // S_pad
    valid = (lane % S_pad) < S
    onehot = seg_id[:, None] == jnp.arange(Bt, dtype=jnp.int32)[None, :]   # (Lt, Bt)
    smean = (onehot & valid[:, None]).astype(jnp.float32) * (1.0 / S)      # masked mean weights
    sbcast = onehot.astype(jnp.float32).T                                  # (Bt, Lt)

    # VMEM budget: double-buffered activation blocks + resident packed params.
    block_bytes = C * Lt * 4
    vmem_limit = int(min(64 * 1024 * 1024,
                         max(32 * 1024 * 1024,
                             12 * block_bytes + wstack.size * 2 + vstack.size * 4
                             + (smean.size + sbcast.size) * 4)))

    out = pl.pallas_call(
        pointcn_kernel,
        out_shape=jax.ShapeDtypeStruct((C, B_pad * S_pad), jnp.float32),
        grid_spec=pltpu.PrefetchScalarGridSpec(
            num_scalar_prefetch=0,
            grid=(nsteps,),
            in_specs=[
                pl.BlockSpec((C, Lt), lambda i: (0, i)),           # activations
                pl.BlockSpec(wstack.shape, lambda i: (0, 0, 0)),   # packed conv weights (resident)
                pl.BlockSpec(vstack.shape, lambda i: (0, 0)),      # packed scale/shift/bias columns
                pl.BlockSpec((Lt, Bt), lambda i: (0, 0)),          # masked segment-mean matrix
                pl.BlockSpec((Bt, Lt), lambda i: (0, 0)),          # segment broadcast matrix
            ],
            out_specs=pl.BlockSpec((C, Lt), lambda i: (0, i)),
        ),
        compiler_params=pltpu.CompilerParams(
            dimension_semantics=("parallel",),
            vmem_limit_bytes=vmem_limit),
    )(x, wstack, vstack, smean, sbcast)

    out = out.reshape(C, B_pad, S_pad).transpose(1, 0, 2)[:B, :, :S]
    return out.reshape(B, C, H, W)


# ----------------------------------------------------------------------------
if __name__ == "__main__":
    key = jax.random.PRNGKey(0)
    k_x, k_p = jax.random.split(key)

    B, C, H, W = 2, 16, 16, 16          # channels == out_channels -> shot_cut is None
    x = jax.random.normal(k_x, (B, C, H, W), dtype=jnp.float32)

    wstack, vstack = make_pointcn_params(k_p, C)
    y = pointcn_forward(x, wstack, vstack)
    jax.block_until_ready(y)

    assert y.shape == (B, C, H, W)
    assert bool(jnp.all(jnp.isfinite(y)))
    print("KERNEL_OK")
</pallas_src>

<mosaic_0001>
module attributes {stable_mosaic.version = 11 : i64} {
  func.func @pointcn_kernel(%arg0: i32, %arg1: memref<16x256xf32, #tpu.memory_space<vmem>>, %arg2: memref<12x16x16xbf16, #tpu.memory_space<vmem>>, %arg3: memref<16x36xf32, #tpu.memory_space<vmem>>, %arg4: memref<256x1xf32, #tpu.memory_space<vmem>>, %arg5: memref<1x256xf32, #tpu.memory_space<vmem>>, %arg6: memref<16x256xf32, #tpu.memory_space<vmem>>) attributes {dimension_semantics = [#tpu.dimension_semantics<parallel>], iteration_bounds = array<i64: 2>, scalar_prefetch = 0 : i64, scratch_operands = 0 : i64, tpu.core_type = #tpu.core_type<tc>, window_params = [{transform_indices = @transform_0, window_bounds = array<i64: 16, 256>}, {pipeline_mode = #tpu.pipeline_mode<synchronous>, transform_indices = @transform_1, window_bounds = array<i64: 12, 16, 16>}, {pipeline_mode = #tpu.pipeline_mode<synchronous>, transform_indices = @transform_2, window_bounds = array<i64: 16, 36>}, {pipeline_mode = #tpu.pipeline_mode<synchronous>, transform_indices = @transform_3, window_bounds = array<i64: 256, 1>}, {pipeline_mode = #tpu.pipeline_mode<synchronous>, transform_indices = @transform_4, window_bounds = array<i64: 1, 256>}, {transform_indices = @transform_5, window_bounds = array<i64: 16, 256>}]} {
    %c0 = arith.constant 0 : index
    %c0_0 = arith.constant 0 : index
    %0 = vector.load %arg1[%c0, %c0_0] : memref<16x256xf32, #tpu.memory_space<vmem>>, vector<16x256xf32>
    %c0_1 = arith.constant 0 : index
    %c0_2 = arith.constant 0 : index
    %1 = vector.load %arg4[%c0_1, %c0_2] : memref<256x1xf32, #tpu.memory_space<vmem>>, vector<256x1xf32>
    %c0_3 = arith.constant 0 : index
    %c0_4 = arith.constant 0 : index
    %2 = vector.load %arg3[%c0_3, %c0_4] : memref<16x36xf32, #tpu.memory_space<vmem>>, vector<16x36xf32>
    %cst = arith.constant dense<0.000000e+00> : vector<16x1xf32>
    %3 = tpu.matmul %0, %1, %cst {dimension_numbers = #tpu.dot_dimension_numbers<[1], [0], [0], [1], [0, 0, 1, 1], [], []>} : vector<16x256xf32>, vector<256x1xf32>, vector<16x1xf32> -> vector<16x1xf32>
    %4 = vector.broadcast %3 : vector<16x1xf32> to vector<16x256xf32>
    %5 = arith.subf %0, %4 : vector<16x256xf32>
    %6 = arith.mulf %5, %5 : vector<16x256xf32>
    %cst_5 = arith.constant dense<0.000000e+00> : vector<16x1xf32>
    %7 = tpu.matmul %6, %1, %cst_5 {dimension_numbers = #tpu.dot_dimension_numbers<[1], [0], [0], [1], [0, 0, 1, 1], [], []>} : vector<16x256xf32>, vector<256x1xf32>, vector<16x1xf32> -> vector<16x1xf32>
    %cst_6 = arith.constant 1.000000e-03 : f32
    %8 = vector.broadcast %cst_6 : f32 to vector<16x1xf32>
    %9 = arith.addf %7, %8 : vector<16x1xf32>
    %10 = math.rsqrt %9 : vector<16x1xf32>
    %11 = vector.broadcast %10 : vector<16x1xf32> to vector<16x256xf32>
    %12 = arith.mulf %5, %11 : vector<16x256xf32>
    %13 = vector.extract_strided_slice %2 {offsets = [0, 0], sizes = [16, 1], strides = [1, 1]} : vector<16x36xf32> to vector<16x1xf32>
    %14 = vector.broadcast %13 : vector<16x1xf32> to vector<16x256xf32>
    %15 = arith.mulf %12, %14 : vector<16x256xf32>
    %16 = vector.extract_strided_slice %2 {offsets = [0, 1], sizes = [16, 1], strides = [1, 1]} : vector<16x36xf32> to vector<16x1xf32>
    %17 = vector.broadcast %16 : vector<16x1xf32> to vector<16x256xf32>
    %18 = arith.addf %15, %17 : vector<16x256xf32>
    %cst_7 = arith.constant 0.000000e+00 : f32
    %19 = vector.broadcast %cst_7 : f32 to vector<16x256xf32>
    %20 = arith.maximumf %18, %19 : vector<16x256xf32>
    %c0_8 = arith.constant 0 : index
    %c0_9 = arith.constant 0 : index
    %c0_10 = arith.constant 0 : index
    %21 = vector.load %arg2[%c0_8, %c0_9, %c0_10] : memref<12x16x16xbf16, #tpu.memory_space<vmem>>, vector<1x16x16xbf16>
    %22 = vector.shape_cast %21 : vector<1x16x16xbf16> to vector<16x16xbf16>
    %23 = arith.truncf %20 : vector<16x256xf32> to vector<16x256xbf16>
    %cst_11 = arith.constant dense<0.000000e+00> : vector<16x256xf32>
    %24 = tpu.matmul %22, %23, %cst_11 {dimension_numbers = #tpu.dot_dimension_numbers<[1], [0], [0], [1], [0, 0, 1, 1], [], []>} : vector<16x16xbf16>, vector<16x256xbf16>, vector<16x256xf32> -> vector<16x256xf32>
    %25 = vector.extract_strided_slice %2 {offsets = [0, 2], sizes = [16, 1], strides = [1, 1]} : vector<16x36xf32> to vector<16x1xf32>
    %26 = vector.broadcast %25 : vector<16x1xf32> to vector<16x256xf32>
    %27 = arith.addf %24, %26 : vector<16x256xf32>
    %cst_12 = arith.constant dense<0.000000e+00> : vector<16x1xf32>
    %28 = tpu.matmul %27, %1, %cst_12 {dimension_numbers = #tpu.dot_dimension_numbers<[1], [0], [0], [1], [0, 0, 1, 1], [], []>} : vector<16x256xf32>, vector<256x1xf32>, vector<16x1xf32> -> vector<16x1xf32>
    %29 = vector.broadcast %28 : vector<16x1xf32> to vector<16x256xf32>
    %30 = arith.subf %27, %29 : vector<16x256xf32>
    %31 = arith.mulf %30, %30 : vector<16x256xf32>
    %cst_13 = arith.constant dense<0.000000e+00> : vector<16x1xf32>
    %32 = tpu.matmul %31, %1, %cst_13 {dimension_numbers = #tpu.dot_dimension_numbers<[1], [0], [0], [1], [0, 0, 1, 1], [], []>} : vector<16x256xf32>, vector<256x1xf32>, vector<16x1xf32> -> vector<16x1xf32>
    %cst_14 = arith.constant 1.000000e-03 : f32
    %33 = vector.broadcast %cst_14 : f32 to vector<16x1xf32>
    %34 = arith.addf %32, %33 : vector<16x1xf32>
    %35 = math.rsqrt %34 : vector<16x1xf32>
    %36 = vector.broadcast %35 : vector<16x1xf32> to vector<16x256xf32>
    %37 = arith.mulf %30, %36 : vector<16x256xf32>
    %38 = vector.extract_strided_slice %2 {offsets = [0, 3], sizes = [16, 1], strides = [1, 1]} : vector<16x36xf32> to vector<16x1xf32>
    %39 = vector.broadcast %38 : vector<16x1xf32> to vector<16x256xf32>
    %40 = arith.mulf %37, %39 : vector<16x256xf32>
    %41 = vector.extract_strided_slice %2 {offsets = [0, 4], sizes = [16, 1], strides = [1, 1]} : vector<16x36xf32> to vector<16x1xf32>
    %42 = vector.broadcast %41 : vector<16x1xf32> to vector<16x256xf32>
    %43 = arith.addf %40, %42 : vector<16x256xf32>
    %cst_15 = arith.constant 0.000000e+00 : f32
    %44 = vector.broadcast %cst_15 : f32 to vector<16x256xf32>
    %45 = arith.maximumf %43, %44 : vector<16x256xf32>
    %c1 = arith.constant 1 : index
    %c0_16 = arith.constant 0 : index
    %c0_17 = arith.constant 0 : index
    %46 = vector.load %arg2[%c1, %c0_16, %c0_17] : memref<12x16x16xbf16, #tpu.memory_space<vmem>>, vector<1x16x16xbf16>
    %47 = vector.shape_cast %46 : vector<1x16x16xbf16> to vector<16x16xbf16>
    %48 = arith.truncf %45 : vector<16x256xf32> to vector<16x256xbf16>
    %cst_18 = arith.constant dense<0.000000e+00> : vector<16x256xf32>
    %49 = tpu.matmul %47, %48, %cst_18 {dimension_numbers = #tpu.dot_dimension_numbers<[1], [0], [0], [1], [0, 0, 1, 1], [], []>} : vector<16x16xbf16>, vector<16x256xbf16>, vector<16x256xf32> -> vector<16x256xf32>
    %50 = vector.extract_strided_slice %2 {offsets = [0, 5], sizes = [16, 1], strides = [1, 1]} : vector<16x36xf32> to vector<16x1xf32>
    %51 = vector.broadcast %50 : vector<16x1xf32> to vector<16x256xf32>
    %52 = arith.addf %49, %51 : vector<16x256xf32>
    %53 = arith.addf %27, %52 : vector<16x256xf32>
    %cst_19 = arith.constant dense<0.000000e+00> : vector<16x1xf32>
    %54 = tpu.matmul %52, %1, %cst_19 {dimension_numbers = #tpu.dot_dimension_numbers<[1], [0], [0], [1], [0, 0, 1, 1], [], []>} : vector<16x256xf32>, vector<256x1xf32>, vector<16x1xf32> -> vector<16x1xf32>
    %55 = vector.broadcast %54 : vector<16x1xf32> to vector<16x256xf32>
    %56 = arith.subf %52, %55 : vector<16x256xf32>
    %57 = arith.mulf %56, %56 : vector<16x256xf32>
    %cst_20 = arith.constant dense<0.000000e+00> : vector<16x1xf32>
    %58 = tpu.matmul %57, %1, %cst_20 {dimension_numbers = #tpu.dot_dimension_numbers<[1], [0], [0], [1], [0, 0, 1, 1], [], []>} : vector<16x256xf32>, vector<256x1xf32>, vector<16x1xf32> -> vector<16x1xf32>
    %cst_21 = arith.constant 1.000000e-03 : f32
    %59 = vector.broadcast %cst_21 : f32 to vector<16x1xf32>
    %60 = arith.addf %58, %59 : vector<16x1xf32>
    %61 = math.rsqrt %60 : vector<16x1xf32>
    %62 = vector.broadcast %61 : vector<16x1xf32> to vector<16x256xf32>
    %63 = arith.mulf %56, %62 : vector<16x256xf32>
    %64 = vector.extract_strided_slice %2 {offsets = [0, 6], sizes = [16, 1], strides = [1, 1]} : vector<16x36xf32> to vector<16x1xf32>
    %65 = vector.broadcast %64 : vector<16x1xf32> to vector<16x256xf32>
    %66 = arith.mulf %63, %65 : vector<16x256xf32>
    %67 = vector.extract_strided_slice %2 {offsets = [0, 7], sizes = [16, 1], strides = [1, 1]} : vector<16x36xf32> to vector<16x1xf32>
    %68 = vector.broadcast %67 : vector<16x1xf32> to vector<16x256xf32>
    %69 = arith.addf %66, %68 : vector<16x256xf32>
    %cst_22 = arith.constant 0.000000e+00 : f32
    %70 = vector.broadcast %cst_22 : f32 to vector<16x256xf32>
    %71 = arith.maximumf %69, %70 : vector<16x256xf32>
    %c2 = arith.constant 2 : index
    %c0_23 = arith.constant 0 : index
    %c0_24 = arith.constant 0 : index
    %72 = vector.load %arg2[%c2, %c0_23, %c0_24] : memref<12x16x16xbf16, #tpu.memory_space<vmem>>, vector<1x16x16xbf16>
    %73 = vector.shape_cast %72 : vector<1x16x16xbf16> to vector<16x16xbf16>
    %74 = arith.truncf %71 : vector<16x256xf32> to vector<16x256xbf16>
    %cst_25 = arith.constant dense<0.000000e+00> : vector<16x256xf32>
    %75 = tpu.matmul %73, %74, %cst_25 {dimension_numbers = #tpu.dot_dimension_numbers<[1], [0], [0], [1], [0, 0, 1, 1], [], []>} : vector<16x16xbf16>, vector<16x256xbf16>, vector<16x256xf32> -> vector<16x256xf32>
    %76 = vector.extract_strided_slice %2 {offsets = [0, 8], sizes = [16, 1], strides = [1, 1]} : vector<16x36xf32> to vector<16x1xf32>
    %77 = vector.broadcast %76 : vector<16x1xf32> to vector<16x256xf32>
    %78 = arith.addf %75, %77 : vector<16x256xf32>
    %79 = arith.addf %53, %78 : vector<16x256xf32>
    %cst_26 = arith.constant dense<0.000000e+00> : vector<16x1xf32>
    %80 = tpu.matmul %78, %1, %cst_26 {dimension_numbers = #tpu.dot_dimension_numbers<[1], [0], [0], [1], [0, 0, 1, 1], [], []>} : vector<16x256xf32>, vector<256x1xf32>, vector<16x1xf32> -> vector<16x1xf32>
    %81 = vector.broadcast %80 : vector<16x1xf32> to vector<16x256xf32>
    %82 = arith.subf %78, %81 : vector<16x256xf32>
    %83 = arith.mulf %82, %82 : vector<16x256xf32>
    %cst_27 = arith.constant dense<0.000000e+00> : vector<16x1xf32>
    %84 = tpu.matmul %83, %1, %cst_27 {dimension_numbers = #tpu.dot_dimension_numbers<[1], [0], [0], [1], [0, 0, 1, 1], [], []>} : vector<16x256xf32>, vector<256x1xf32>, vector<16x1xf32> -> vector<16x1xf32>
    %cst_28 = arith.constant 1.000000e-03 : f32
    %85 = vector.broadcast %cst_28 : f32 to vector<16x1xf32>
    %86 = arith.addf %84, %85 : vector<16x1xf32>
    %87 = math.rsqrt %86 : vector<16x1xf32>
    %88 = vector.broadcast %87 : vector<16x1xf32> to vector<16x256xf32>
    %89 = arith.mulf %82, %88 : vector<16x256xf32>
    %90 = vector.extract_strided_slice %2 {offsets = [0, 9], sizes = [16, 1], strides = [1, 1]} : vector<16x36xf32> to vector<16x1xf32>
    %91 = vector.broadcast %90 : vector<16x1xf32> to vector<16x256xf32>
    %92 = arith.mulf %89, %91 : vector<16x256xf32>
    %93 = vector.extract_strided_slice %2 {offsets = [0, 10], sizes = [16, 1], strides = [1, 1]} : vector<16x36xf32> to vector<16x1xf32>
    %94 = vector.broadcast %93 : vector<16x1xf32> to vector<16x256xf32>
    %95 = arith.addf %92, %94 : vector<16x256xf32>
    %cst_29 = arith.constant 0.000000e+00 : f32
    %96 = vector.broadcast %cst_29 : f32 to vector<16x256xf32>
    %97 = arith.maximumf %95, %96 : vector<16x256xf32>
    %c3 = arith.constant 3 : index
    %c0_30 = arith.constant 0 : index
    %c0_31 = arith.constant 0 : index
    %98 = vector.load %arg2[%c3, %c0_30, %c0_31] : memref<12x16x16xbf16, #tpu.memory_space<vmem>>, vector<1x16x16xbf16>
    %99 = vector.shape_cast %98 : vector<1x16x16xbf16> to vector<16x16xbf16>
    %100 = arith.truncf %97 : vector<16x256xf32> to vector<16x256xbf16>
    %cst_32 = arith.constant dense<0.000000e+00> : vector<16x256xf32>
    %101 = tpu.matmul %99, %100, %cst_32 {dimension_numbers = #tpu.dot_dimension_numbers<[1], [0], [0], [1], [0, 0, 1, 1], [], []>} : vector<16x16xbf16>, vector<16x256xbf16>, vector<16x256xf32> -> vector<16x256xf32>
    %102 = vector.extract_strided_slice %2 {offsets = [0, 11], sizes = [16, 1], strides = [1, 1]} : vector<16x36xf32> to vector<16x1xf32>
    %103 = vector.broadcast %102 : vector<16x1xf32> to vector<16x256xf32>
    %104 = arith.addf %101, %103 : vector<16x256xf32>
    %105 = arith.addf %79, %104 : vector<16x256xf32>
    %c8 = arith.constant 8 : index
    %c0_33 = arith.constant 0 : index
    %c0_34 = arith.constant 0 : index
    %106 = vector.load %arg2[%c8, %c0_33, %c0_34] : memref<12x16x16xbf16, #tpu.memory_space<vmem>>, vector<1x16x16xbf16>
    %107 = vector.shape_cast %106 : vector<1x16x16xbf16> to vector<16x16xbf16>
    %108 = arith.truncf %105 : vector<16x256xf32> to vector<16x256xbf16>
    %cst_35 = arith.constant dense<0.000000e+00> : vector<16x256xf32>
    %109 = tpu.matmul %107, %108, %cst_35 {dimension_numbers = #tpu.dot_dimension_numbers<[1], [0], [0], [1], [0, 0, 1, 1], [], []>} : vector<16x16xbf16>, vector<16x256xbf16>, vector<16x256xf32> -> vector<16x256xf32>
    %110 = vector.extract_strided_slice %2 {offsets = [0, 24], sizes = [16, 1], strides = [1, 1]} : vector<16x36xf32> to vector<16x1xf32>
    %111 = vector.broadcast %110 : vector<16x1xf32> to vector<16x256xf32>
    %112 = arith.addf %109, %111 : vector<16x256xf32>
    %113 = vector.extract_strided_slice %2 {offsets = [0, 25], sizes = [16, 1], strides = [1, 1]} : vector<16x36xf32> to vector<16x1xf32>
    %114 = vector.broadcast %113 : vector<16x1xf32> to vector<16x256xf32>
    %115 = arith.mulf %112, %114 : vector<16x256xf32>
    %116 = vector.extract_strided_slice %2 {offsets = [0, 26], sizes = [16, 1], strides = [1, 1]} : vector<16x36xf32> to vector<16x1xf32>
    %117 = vector.broadcast %116 : vector<16x1xf32> to vector<16x256xf32>
    %118 = arith.addf %115, %117 : vector<16x256xf32>
    %cst_36 = arith.constant 0.000000e+00 : f32
    %119 = vector.broadcast %cst_36 : f32 to vector<16x256xf32>
    %120 = arith.maximumf %118, %119 : vector<16x256xf32>
    %c9 = arith.constant 9 : index
    %c0_37 = arith.constant 0 : index
    %c0_38 = arith.constant 0 : index
    %121 = vector.load %arg2[%c9, %c0_37, %c0_38] : memref<12x16x16xbf16, #tpu.memory_space<vmem>>, vector<1x16x16xbf16>
    %122 = vector.shape_cast %121 : vector<1x16x16xbf16> to vector<16x16xbf16>
    %123 = arith.truncf %120 : vector<16x256xf32> to vector<16x256xbf16>
    %cst_39 = arith.constant dense<0.000000e+00> : vector<16x256xf32>
    %124 = tpu.matmul %122, %123, %cst_39 {dimension_numbers = #tpu.dot_dimension_numbers<[1], [0], [0], [1], [0, 0, 1, 1], [], []>} : vector<16x16xbf16>, vector<16x256xbf16>, vector<16x256xf32> -> vector<16x256xf32>
    %125 = vector.extract_strided_slice %2 {offsets = [0, 27], sizes = [16, 1], strides = [1, 1]} : vector<16x36xf32> to vector<16x1xf32>
    %126 = vector.broadcast %125 : vector<16x1xf32> to vector<16x256xf32>
    %127 = arith.addf %124, %126 : vector<16x256xf32>
    %128 = vector.extract_strided_slice %2 {offsets = [0, 28], sizes = [16, 1], strides = [1, 1]} : vector<16x36xf32> to vector<16x1xf32>
    %129 = vector.broadcast %128 : vector<16x1xf32> to vector<16x256xf32>
    %130 = arith.mulf %127, %129 : vector<16x256xf32>
    %131 = vector.extract_strided_slice %2 {offsets = [0, 29], sizes = [16, 1], strides = [1, 1]} : vector<16x36xf32> to vector<16x1xf32>
    %132 = vector.broadcast %131 : vector<16x1xf32> to vector<16x256xf32>
    %133 = arith.addf %130, %132 : vector<16x256xf32>
    %cst_40 = arith.constant dense<0.000000e+00> : vector<16x1xf32>
    %134 = tpu.matmul %105, %1, %cst_40 {dimension_numbers = #tpu.dot_dimension_numbers<[1], [0], [0], [1], [0, 0, 1, 1], [], []>} : vector<16x256xf32>, vector<256x1xf32>, vector<16x1xf32> -> vector<16x1xf32>
    %c10 = arith.constant 10 : index
    %c0_41 = arith.constant 0 : index
    %c0_42 = arith.constant 0 : index
    %135 = vector.load %arg2[%c10, %c0_41, %c0_42] : memref<12x16x16xbf16, #tpu.memory_space<vmem>>, vector<1x16x16xbf16>
    %136 = vector.shape_cast %135 : vector<1x16x16xbf16> to vector<16x16xbf16>
    %137 = arith.truncf %134 : vector<16x1xf32> to vector<16x1xbf16>
    %cst_43 = arith.constant dense<0.000000e+00> : vector<16x1xf32>
    %138 = tpu.matmul %136, %137, %cst_43 {dimension_numbers = #tpu.dot_dimension_numbers<[1], [0], [0], [1], [0, 0, 1, 1], [], []>} : vector<16x16xbf16>, vector<16x1xbf16>, vector<16x1xf32> -> vector<16x1xf32>
    %139 = vector.extract_strided_slice %2 {offsets = [0, 30], sizes = [16, 1], strides = [1, 1]} : vector<16x36xf32> to vector<16x1xf32>
    %140 = arith.addf %138, %139 : vector<16x1xf32>
    %141 = vector.extract_strided_slice %2 {offsets = [0, 31], sizes = [16, 1], strides = [1, 1]} : vector<16x36xf32> to vector<16x1xf32>
    %142 = arith.mulf %140, %141 : vector<16x1xf32>
    %143 = vector.extract_strided_slice %2 {offsets = [0, 32], sizes = [16, 1], strides = [1, 1]} : vector<16x36xf32> to vector<16x1xf32>
    %144 = arith.addf %142, %143 : vector<16x1xf32>
    %cst_44 = arith.constant 0.000000e+00 : f32
    %145 = vector.broadcast %cst_44 : f32 to vector<16x1xf32>
    %146 = arith.maximumf %144, %145 : vector<16x1xf32>
    %c11 = arith.constant 11 : index
    %c0_45 = arith.constant 0 : index
    %c0_46 = arith.constant 0 : index
    %147 = vector.load %arg2[%c11, %c0_45, %c0_46] : memref<12x16x16xbf16, #tpu.memory_space<vmem>>, vector<1x16x16xbf16>
    %148 = vector.shape_cast %147 : vector<1x16x16xbf16> to vector<16x16xbf16>
    %149 = arith.truncf %146 : vector<16x1xf32> to vector<16x1xbf16>
    %cst_47 = arith.constant dense<0.000000e+00> : vector<16x1xf32>
    %150 = tpu.matmul %148, %149, %cst_47 {dimension_numbers = #tpu.dot_dimension_numbers<[1], [0], [0], [1], [0, 0, 1, 1], [], []>} : vector<16x16xbf16>, vector<16x1xbf16>, vector<16x1xf32> -> vector<16x1xf32>
    %151 = vector.extract_strided_slice %2 {offsets = [0, 33], sizes = [16, 1], strides = [1, 1]} : vector<16x36xf32> to vector<16x1xf32>
    %152 = arith.addf %150, %151 : vector<16x1xf32>
    %153 = vector.extract_strided_slice %2 {offsets = [0, 34], sizes = [16, 1], strides = [1, 1]} : vector<16x36xf32> to vector<16x1xf32>
    %154 = arith.mulf %152, %153 : vector<16x1xf32>
    %155 = vector.extract_strided_slice %2 {offsets = [0, 35], sizes = [16, 1], strides = [1, 1]} : vector<16x36xf32> to vector<16x1xf32>
    %156 = arith.addf %154, %155 : vector<16x1xf32>
    %157 = vector.broadcast %156 : vector<16x1xf32> to vector<16x256xf32>
    %158 = arith.addf %133, %157 : vector<16x256xf32>
    %159 = arith.negf %158 : vector<16x256xf32>
    %160 = math.exp %159 : vector<16x256xf32>
    %cst_48 = arith.constant 1.000000e+00 : f32
    %161 = vector.broadcast %cst_48 : f32 to vector<16x256xf32>
    %162 = arith.addf %161, %160 : vector<16x256xf32>
    %163 = arith.divf %161, %162 : vector<16x256xf32>
    %164 = arith.mulf %163, %105 : vector<16x256xf32>
    %cst_49 = arith.constant dense<0.000000e+00> : vector<16x1xf32>
    %165 = tpu.matmul %164, %1, %cst_49 {dimension_numbers = #tpu.dot_dimension_numbers<[1], [0], [0], [1], [0, 0, 1, 1], [], []>} : vector<16x256xf32>, vector<256x1xf32>, vector<16x1xf32> -> vector<16x1xf32>
    %166 = vector.broadcast %165 : vector<16x1xf32> to vector<16x256xf32>
    %167 = arith.subf %164, %166 : vector<16x256xf32>
    %168 = arith.mulf %167, %167 : vector<16x256xf32>
    %cst_50 = arith.constant dense<0.000000e+00> : vector<16x1xf32>
    %169 = tpu.matmul %168, %1, %cst_50 {dimension_numbers = #tpu.dot_dimension_numbers<[1], [0], [0], [1], [0, 0, 1, 1], [], []>} : vector<16x256xf32>, vector<256x1xf32>, vector<16x1xf32> -> vector<16x1xf32>
    %cst_51 = arith.constant 1.000000e-03 : f32
    %170 = vector.broadcast %cst_51 : f32 to vector<16x1xf32>
    %171 = arith.addf %169, %170 : vector<16x1xf32>
    %172 = math.rsqrt %171 : vector<16x1xf32>
    %173 = vector.broadcast %172 : vector<16x1xf32> to vector<16x256xf32>
    %174 = arith.mulf %167, %173 : vector<16x256xf32>
    %175 = vector.extract_strided_slice %2 {offsets = [0, 12], sizes = [16, 1], strides = [1, 1]} : vector<16x36xf32> to vector<16x1xf32>
    %176 = vector.broadcast %175 : vector<16x1xf32> to vector<16x256xf32>
    %177 = arith.mulf %174, %176 : vector<16x256xf32>
    %178 = vector.extract_strided_slice %2 {offsets = [0, 13], sizes = [16, 1], strides = [1, 1]} : vector<16x36xf32> to vector<16x1xf32>
    %179 = vector.broadcast %178 : vector<16x1xf32> to vector<16x256xf32>
    %180 = arith.addf %177, %179 : vector<16x256xf32>
    %cst_52 = arith.constant 0.000000e+00 : f32
    %181 = vector.broadcast %cst_52 : f32 to vector<16x256xf32>
    %182 = arith.maximumf %180, %181 : vector<16x256xf32>
    %c4 = arith.constant 4 : index
    %c0_53 = arith.constant 0 : index
    %c0_54 = arith.constant 0 : index
    %183 = vector.load %arg2[%c4, %c0_53, %c0_54] : memref<12x16x16xbf16, #tpu.memory_space<vmem>>, vector<1x16x16xbf16>
    %184 = vector.shape_cast %183 : vector<1x16x16xbf16> to vector<16x16xbf16>
    %185 = arith.truncf %182 : vector<16x256xf32> to vector<16x256xbf16>
    %cst_55 = arith.constant dense<0.000000e+00> : vector<16x256xf32>
    %186 = tpu.matmul %184, %185, %cst_55 {dimension_numbers = #tpu.dot_dimension_numbers<[1], [0], [0], [1], [0, 0, 1, 1], [], []>} : vector<16x16xbf16>, vector<16x256xbf16>, vector<16x256xf32> -> vector<16x256xf32>
    %187 = vector.extract_strided_slice %2 {offsets = [0, 14], sizes = [16, 1], strides = [1, 1]} : vector<16x36xf32> to vector<16x1xf32>
    %188 = vector.broadcast %187 : vector<16x1xf32> to vector<16x256xf32>
    %189 = arith.addf %186, %188 : vector<16x256xf32>
    %cst_56 = arith.constant dense<0.000000e+00> : vector<16x1xf32>
    %190 = tpu.matmul %189, %1, %cst_56 {dimension_numbers = #tpu.dot_dimension_numbers<[1], [0], [0], [1], [0, 0, 1, 1], [], []>} : vector<16x256xf32>, vector<256x1xf32>, vector<16x1xf32> -> vector<16x1xf32>
    %191 = vector.broadcast %190 : vector<16x1xf32> to vector<16x256xf32>
    %192 = arith.subf %189, %191 : vector<16x256xf32>
    %193 = arith.mulf %192, %192 : vector<16x256xf32>
    %cst_57 = arith.constant dense<0.000000e+00> : vector<16x1xf32>
    %194 = tpu.matmul %193, %1, %cst_57 {dimension_numbers = #tpu.dot_dimension_numbers<[1], [0], [0], [1], [0, 0, 1, 1], [], []>} : vector<16x256xf32>, vector<256x1xf32>, vector<16x1xf32> -> vector<16x1xf32>
    %cst_58 = arith.constant 1.000000e-03 : f32
    %195 = vector.broadcast %cst_58 : f32 to vector<16x1xf32>
    %196 = arith.addf %194, %195 : vector<16x1xf32>
    %197 = math.rsqrt %196 : vector<16x1xf32>
    %198 = vector.broadcast %197 : vector<16x1xf32> to vector<16x256xf32>
    %199 = arith.mulf %192, %198 : vector<16x256xf32>
    %200 = vector.extract_strided_slice %2 {offsets = [0, 15], sizes = [16, 1], strides = [1, 1]} : vector<16x36xf32> to vector<16x1xf32>
    %201 = vector.broadcast %200 : vector<16x1xf32> to vector<16x256xf32>
    %202 = arith.mulf %199, %201 : vector<16x256xf32>
    %203 = vector.extract_strided_slice %2 {offsets = [0, 16], sizes = [16, 1], strides = [1, 1]} : vector<16x36xf32> to vector<16x1xf32>
    %204 = vector.broadcast %203 : vector<16x1xf32> to vector<16x256xf32>
    %205 = arith.addf %202, %204 : vector<16x256xf32>
    %cst_59 = arith.constant 0.000000e+00 : f32
    %206 = vector.broadcast %cst_59 : f32 to vector<16x256xf32>
    %207 = arith.maximumf %205, %206 : vector<16x256xf32>
    %c5 = arith.constant 5 : index
    %c0_60 = arith.constant 0 : index
    %c0_61 = arith.constant 0 : index
    %208 = vector.load %arg2[%c5, %c0_60, %c0_61] : memref<12x16x16xbf16, #tpu.memory_space<vmem>>, vector<1x16x16xbf16>
    %209 = vector.shape_cast %208 : vector<1x16x16xbf16> to vector<16x16xbf16>
    %210 = arith.truncf %207 : vector<16x256xf32> to vector<16x256xbf16>
    %cst_62 = arith.constant dense<0.000000e+00> : vector<16x256xf32>
    %211 = tpu.matmul %209, %210, %cst_62 {dimension_numbers = #tpu.dot_dimension_numbers<[1], [0], [0], [1], [0, 0, 1, 1], [], []>} : vector<16x16xbf16>, vector<16x256xbf16>, vector<16x256xf32> -> vector<16x256xf32>
    %212 = vector.extract_strided_slice %2 {offsets = [0, 17], sizes = [16, 1], strides = [1, 1]} : vector<16x36xf32> to vector<16x1xf32>
    %213 = vector.broadcast %212 : vector<16x1xf32> to vector<16x256xf32>
    %214 = arith.addf %211, %213 : vector<16x256xf32>
    %215 = arith.addf %189, %214 : vector<16x256xf32>
    %cst_63 = arith.constant dense<0.000000e+00> : vector<16x1xf32>
    %216 = tpu.matmul %214, %1, %cst_63 {dimension_numbers = #tpu.dot_dimension_numbers<[1], [0], [0], [1], [0, 0, 1, 1], [], []>} : vector<16x256xf32>, vector<256x1xf32>, vector<16x1xf32> -> vector<16x1xf32>
    %217 = vector.broadcast %216 : vector<16x1xf32> to vector<16x256xf32>
    %218 = arith.subf %214, %217 : vector<16x256xf32>
    %219 = arith.mulf %218, %218 : vector<16x256xf32>
    %cst_64 = arith.constant dense<0.000000e+00> : vector<16x1xf32>
    %220 = tpu.matmul %219, %1, %cst_64 {dimension_numbers = #tpu.dot_dimension_numbers<[1], [0], [0], [1], [0, 0, 1, 1], [], []>} : vector<16x256xf32>, vector<256x1xf32>, vector<16x1xf32> -> vector<16x1xf32>
    %cst_65 = arith.constant 1.000000e-03 : f32
    %221 = vector.broadcast %cst_65 : f32 to vector<16x1xf32>
    %222 = arith.addf %220, %221 : vector<16x1xf32>
    %223 = math.rsqrt %222 : vector<16x1xf32>
    %224 = vector.broadcast %223 : vector<16x1xf32> to vector<16x256xf32>
    %225 = arith.mulf %218, %224 : vector<16x256xf32>
    %226 = vector.extract_strided_slice %2 {offsets = [0, 18], sizes = [16, 1], strides = [1, 1]} : vector<16x36xf32> to vector<16x1xf32>
    %227 = vector.broadcast %226 : vector<16x1xf32> to vector<16x256xf32>
    %228 = arith.mulf %225, %227 : vector<16x256xf32>
    %229 = vector.extract_strided_slice %2 {offsets = [0, 19], sizes = [16, 1], strides = [1, 1]} : vector<16x36xf32> to vector<16x1xf32>
    %230 = vector.broadcast %229 : vector<16x1xf32> to vector<16x256xf32>
    %231 = arith.addf %228, %230 : vector<16x256xf32>
    %cst_66 = arith.constant 0.000000e+00 : f32
    %232 = vector.broadcast %cst_66 : f32 to vector<16x256xf32>
    %233 = arith.maximumf %231, %232 : vector<16x256xf32>
    %c6 = arith.constant 6 : index
    %c0_67 = arith.constant 0 : index
    %c0_68 = arith.constant 0 : index
    %234 = vector.load %arg2[%c6, %c0_67, %c0_68] : memref<12x16x16xbf16, #tpu.memory_space<vmem>>, vector<1x16x16xbf16>
    %235 = vector.shape_cast %234 : vector<1x16x16xbf16> to vector<16x16xbf16>
    %236 = arith.truncf %233 : vector<16x256xf32> to vector<16x256xbf16>
    %cst_69 = arith.constant dense<0.000000e+00> : vector<16x256xf32>
    %237 = tpu.matmul %235, %236, %cst_69 {dimension_numbers = #tpu.dot_dimension_numbers<[1], [0], [0], [1], [0, 0, 1, 1], [], []>} : vector<16x16xbf16>, vector<16x256xbf16>, vector<16x256xf32> -> vector<16x256xf32>
    %238 = vector.extract_strided_slice %2 {offsets = [0, 20], sizes = [16, 1], strides = [1, 1]} : vector<16x36xf32> to vector<16x1xf32>
    %239 = vector.broadcast %238 : vector<16x1xf32> to vector<16x256xf32>
    %240 = arith.addf %237, %239 : vector<16x256xf32>
    %241 = arith.addf %215, %240 : vector<16x256xf32>
    %cst_70 = arith.constant dense<0.000000e+00> : vector<16x1xf32>
    %242 = tpu.matmul %240, %1, %cst_70 {dimension_numbers = #tpu.dot_dimension_numbers<[1], [0], [0], [1], [0, 0, 1, 1], [], []>} : vector<16x256xf32>, vector<256x1xf32>, vector<16x1xf32> -> vector<16x1xf32>
    %243 = vector.broadcast %242 : vector<16x1xf32> to vector<16x256xf32>
    %244 = arith.subf %240, %243 : vector<16x256xf32>
    %245 = arith.mulf %244, %244 : vector<16x256xf32>
    %cst_71 = arith.constant dense<0.000000e+00> : vector<16x1xf32>
    %246 = tpu.matmul %245, %1, %cst_71 {dimension_numbers = #tpu.dot_dimension_numbers<[1], [0], [0], [1], [0, 0, 1, 1], [], []>} : vector<16x256xf32>, vector<256x1xf32>, vector<16x1xf32> -> vector<16x1xf32>
    %cst_72 = arith.constant 1.000000e-03 : f32
    %247 = vector.broadcast %cst_72 : f32 to vector<16x1xf32>
    %248 = arith.addf %246, %247 : vector<16x1xf32>
    %249 = math.rsqrt %248 : vector<16x1xf32>
    %250 = vector.broadcast %249 : vector<16x1xf32> to vector<16x256xf32>
    %251 = arith.mulf %244, %250 : vector<16x256xf32>
    %252 = vector.extract_strided_slice %2 {offsets = [0, 21], sizes = [16, 1], strides = [1, 1]} : vector<16x36xf32> to vector<16x1xf32>
    %253 = vector.broadcast %252 : vector<16x1xf32> to vector<16x256xf32>
    %254 = arith.mulf %251, %253 : vector<16x256xf32>
    %255 = vector.extract_strided_slice %2 {offsets = [0, 22], sizes = [16, 1], strides = [1, 1]} : vector<16x36xf32> to vector<16x1xf32>
    %256 = vector.broadcast %255 : vector<16x1xf32> to vector<16x256xf32>
    %257 = arith.addf %254, %256 : vector<16x256xf32>
    %cst_73 = arith.constant 0.000000e+00 : f32
    %258 = vector.broadcast %cst_73 : f32 to vector<16x256xf32>
    %259 = arith.maximumf %257, %258 : vector<16x256xf32>
    %c7 = arith.constant 7 : index
    %c0_74 = arith.constant 0 : index
    %c0_75 = arith.constant 0 : index
    %260 = vector.load %arg2[%c7, %c0_74, %c0_75] : memref<12x16x16xbf16, #tpu.memory_space<vmem>>, vector<1x16x16xbf16>
    %261 = vector.shape_cast %260 : vector<1x16x16xbf16> to vector<16x16xbf16>
    %262 = arith.truncf %259 : vector<16x256xf32> to vector<16x256xbf16>
    %cst_76 = arith.constant dense<0.000000e+00> : vector<16x256xf32>
    %263 = tpu.matmul %261, %262, %cst_76 {dimension_numbers = #tpu.dot_dimension_numbers<[1], [0], [0], [1], [0, 0, 1, 1], [], []>} : vector<16x16xbf16>, vector<16x256xbf16>, vector<16x256xf32> -> vector<16x256xf32>
    %264 = vector.extract_strided_slice %2 {offsets = [0, 23], sizes = [16, 1], strides = [1, 1]} : vector<16x36xf32> to vector<16x1xf32>
    %265 = vector.broadcast %264 : vector<16x1xf32> to vector<16x256xf32>
    %266 = arith.addf %263, %265 : vector<16x256xf32>
    %267 = arith.addf %241, %266 : vector<16x256xf32>
    %268 = arith.addf %267, %0 : vector<16x256xf32>
    %c0_77 = arith.constant 0 : index
    %c0_78 = arith.constant 0 : index
    %269 = vector.load %arg6[%c0_77, %c0_78] : memref<16x256xf32, #tpu.memory_space<vmem>>, vector<16x256xf32>
    tpu.vector_store %arg6[%c0_77, %c0_78], %268 {strides = array<i32>} : memref<16x256xf32, #tpu.memory_space<vmem>>, vector<16x256xf32>,
    return
  }
  func.func @transform_0(%arg0: i32) -> (i32, i32) {
    %c0_i32 = arith.constant 0 : i32
    %c0_i32_0 = arith.constant 0 : i32
    return %c0_i32, %arg0 : i32, i32
  }
  func.func @transform_1(%arg0: i32) -> (i32, i32, i32) {
    %c0_i32 = arith.constant 0 : i32
    %c0_i32_0 = arith.constant 0 : i32
    %c0_i32_1 = arith.constant 0 : i32
    %c0_i32_2 = arith.constant 0 : i32
    return %c0_i32, %c0_i32_0, %c0_i32_1 : i32, i32, i32
  }
  func.func @transform_2(%arg0: i32) -> (i32, i32) {
    %c0_i32 = arith.constant 0 : i32
    %c0_i32_0 = arith.constant 0 : i32
    %c0_i32_1 = arith.constant 0 : i32
    return %c0_i32, %c0_i32_0 : i32, i32
  }
  func.func @transform_3(%arg0: i32) -> (i32, i32) {
    %c0_i32 = arith.constant 0 : i32
    %c0_i32_0 = arith.constant 0 : i32
    %c0_i32_1 = arith.constant 0 : i32
    return %c0_i32, %c0_i32_0 : i32, i32
  }
  func.func @transform_4(%arg0: i32) -> (i32, i32) {
    %c0_i32 = arith.constant 0 : i32
    %c0_i32_0 = arith.constant 0 : i32
    %c0_i32_1 = arith.constant 0 : i32
    return %c0_i32, %c0_i32_0 : i32, i32
  }
  func.func @transform_5(%arg0: i32) -> (i32, i32) {
    %c0_i32 = arith.constant 0 : i32
    %c0_i32_0 = arith.constant 0 : i32
    return %c0_i32, %arg0 : i32, i32
  }
}

</mosaic_0001>

<bundles_post_ra>
// kernel: pointcn_forward.1
= control target key start
LH: loop header
LB: loop body
LE: loop exit
PB: predicated region body
PF: predicated region fallthrough
CT: control target
= control target key end

     0   :  { %s4633_s18 = smov 0   ;;  %s4635_s19 = smov 0   ;;  %s5481_s0 = inlined_call_operand.vmem [shape: f32[16,512], index: 0, kind: input, shape index: {}]   ;;  %s5482_s1 = inlined_call_operand.vmem [shape: bf16[12,16,16], index: 1, kind: input, shape index: {}]   ;;  %s5483_s2 = inlined_call_operand.vmem [shape: f32[16,36], index: 2, kind: input, shape index: {}]   ;;  %s5484_s3 = inlined_call_operand.vmem [shape: f32[256,1], index: 3, kind: input, shape index: {}]   ;;  %s5485_s4 = inlined_call_operand.vmem [shape: f32[1,256], index: 4, kind: input, shape index: {}]   ;;  %s5486_s5 = inlined_call_operand.vmem [shape: f32[16,512], index: 5, kind: output, shape index: {}]  }
   0x1   :  { %s4637_s20 = smov 0  }
   0x2 LB: > { %s3066_s4 = sadd.s32 4294967295, %s4563_s20   ;;  %s4650_s21 = sadd.s32 1, %s4563_s20   ;;  %s4563_s20 = sphi %s4637_s20, %s5490_s20   ;;  %s4559_s19 = sphi %s4635_s19, %s5489_s19   ;;  %s4555_s18 = sphi %s4633_s18, %s5488_s18  }
   0x3   : > { %s19_s22 = ssub.s32 %s4563_s20, %s4650_s21  ;;  %s22_s23 = sadd.s32 1, %s4559_s19 }
   0x4   : > { %p20_p0 = scmp.eq.s32.totalorder %s19_s22, 0  ;;  %p29_p1 = scmp.ne.s32.totalorder %s4559_s19, %s4555_s18 }
   0x5   : > { %p30_p2 = scmp.eq.s32.totalorder %s4563_s20, 0  ;;  %p143_p3 = scmp.eq.s32.totalorder %s3066_s4, 1 }
   0x6   : > { %s4661_s24 = scalar_select %p20_p0, %s4559_s19, %s22_s23  }
   0x7   : > { %p31_p4 = por %p30_p2, %p29_p1  ;;  %p4663_p5 = por %p143_p3, %p29_p1 }
   0x8   : > { %p3069_p6 = scmp.ge.s32.totalorder %s4563_s20, 2 }
   0xa   : > { %177 = sbr.rel (%p3069_p6) target bundleno = 24 (0x18), region = 32 }
  0x11   : > { %180 = sbr.rel (!%p31_p4) target bundleno = 24 (0x18), region = 36  ;;  %s182_s26 = sand.u32 (%p31_p4), 1, %s4559_s19  }
  0x12   : > { %s3131_s27 = sshll.u32 (%p31_p4), %s4563_s20, 4  ;;  %s3070_s28 = sshll.u32 (%p31_p4), %s182_s26, 5 }
  0x13   : > { %s187_s6 = scalar_lea.vmem (%p31_p4), %s5481_s0, %s3131_s27  ;;  %s184_s7 = scalar_lea.vmem (%p31_p4), [#allocation2], %s3070_s28 }
  0x14   : > { %v200_v0 = vld [vmem:[%s187_s6] sm:$0xff] (%p31_p4)  ;;  %v202_v1 = vld [vmem:[%s187_s6 + $0x8] sm:$0xff] (%p31_p4) }
  0x15   : > { %v204_v2 = vld [vmem:[%s187_s6 + $0x20] sm:$0xff] (%p31_p4)  ;;  %201 = vst [vmem:[%s184_s7] sm:$0xff] (%p31_p4), %v200_v0  ;;  %203 = vst [vmem:[%s184_s7 + $0x8] sm:$0xff] (%p31_p4), %v202_v1  ;;  %v206_v3 = vld [vmem:[%s187_s6 + $0x28] sm:$0xff] (%p31_p4) }
  0x16   : > { %205 = vst [vmem:[%s184_s7 + $0x10] sm:$0xff] (%p31_p4), %v204_v2  ;;  %207 = vst [vmem:[%s184_s7 + $0x18] sm:$0xff] (%p31_p4), %v206_v3 }
  0x18 PF: > { %p3073_p7 = scmp.ge.s32.totalorder %s4563_s20, 1  ;;  %p212_p8 = scmp.lt.s32.totalorder %s4563_s20, 3 }
  0x1a   : > { %p213_p9 = pnand %p3073_p7, %p212_p8 }
  0x1b   : > { %v268_v4 = vld [vmem:[%s5484_s3 + $0x80] sm:$0xff] (!%p213_p9)  ;;  %v269_v5 = vld [vmem:[%s5484_s3 + $0x88] sm:$0xff] (!%p213_p9)  ;;  %v270_v9 = vld [vmem:[%s5484_s3 + $0x90] sm:$0xff] (!%p213_p9)  ;;  %s219_s26 = sand.u32 (!%p213_p9), 1, %s4555_s18   ;;  %v4565_v56 = vmov (!%p213_p9), 0   ;;  %vm517_vm0 = vcmask (!%p213_p9), 130048  }
  0x1c   : > { %216 = sbr.rel (%p213_p9) target bundleno = 8464 (0x2110), region = 59  ;;  %v252_v6 = vld [vmem:[%s5484_s3] sm:$0xff] (!%p213_p9)  ;;  %v4684_v7 = vpack.c.bf16 (!%p213_p9), %v269_v5, %v268_v4  ;;  %v253_v8 = vld [vmem:[%s5484_s3 + $0x8] sm:$0xff] (!%p213_p9)  ;;  %v271_v10 = vld [vmem:[%s5484_s3 + $0x98] sm:$0xff] (!%p213_p9)  ;;  %s4717_s9 = sshll.u32 (!%p213_p9), %s219_s26, 5  ;;  %4401 = vset.pattern.permute.xlu0 (!%p213_p9), %v4565_v56  ;;  %4402 = vset.pattern.permute.xlu1 (!%p213_p9), %v4565_v56  ;;  %vm4590_vm1 = vmmov (!%p213_p9), 0  }
  0x1d   : > { %v4696_v11 = vpack.c.bf16 (!%p213_p9), %v253_v8, %v252_v6  ;;  %v4698_v12 = vpack.c.bf16 (!%p213_p9), %v271_v10, %v270_v9  ;;  %v254_v13 = vld [vmem:[%s5484_s3 + $0x10] sm:$0xff] (!%p213_p9)  ;;  %v255_v14 = vld [vmem:[%s5484_s3 + $0x18] sm:$0xff] (!%p213_p9)  ;;  %v272_v15 = vld [vmem:[%s5484_s3 + $0xa0] sm:$0xff] (!%p213_p9)  ;;  %s4757_s7 = scalar_lea.vmem (!%p213_p9), [#allocation2], %s4717_s9  ;;  %s4580_s16 = smov (!%p213_p9), 98  }
  0x1e   : > { %3796 = vmatprep.subr.bf16.mxu0 (!%p213_p9), %v4684_v7  ;;  %v273_v16 = vld [vmem:[%s5484_s3 + $0xa8] sm:$0xff] (!%p213_p9)  ;;  %3828 = vmatprep.subr.bf16.mxu1 (!%p213_p9), %v4684_v7  ;;  %v4715_v17 = vpack.c.bf16 (!%p213_p9), %v255_v14, %v254_v13  ;;  %v256_v19 = vld [vmem:[%s5484_s3 + $0x20] sm:$0xff] (!%p213_p9)  ;;  %v274_v21 = vld [vmem:[%s5484_s3 + $0xb0] sm:$0xff] (!%p213_p9)  ;;  %v4566_v14 = vmov (!%p213_p9), 1   ;;  %s4583_s17 = smov (!%p213_p9), 97   ;;  %s4584_s26 = smov (!%p213_p9), 96  }
  0x1f   : > { %3798 = vmatpush3.bf16.msra.mxu0 (!%p213_p9), %v4696_v11  ;;  %3830 = vmatpush3.bf16.msra.mxu1 (!%p213_p9), %v4696_v11  ;;  %v4721_v18 = vpack.c.bf16 (!%p213_p9), %v273_v16, %v272_v15  ;;  %v257_v20 = vld [vmem:[%s5484_s3 + $0x28] sm:$0xff] (!%p213_p9)  ;;  %v275_v22 = vld [vmem:[%s5484_s3 + $0xb8] sm:$0xff] (!%p213_p9)  ;;  %v258_v25 = vld [vmem:[%s5484_s3 + $0x30] sm:$0xff] (!%p213_p9)  ;;  %s4585_s27 = smov (!%p213_p9), 95   ;;  %s4586_s28 = smov (!%p213_p9), 94  }
  0x20   : > { %3800 = vmatprep.subr.bf16.mxu0 (!%p213_p9), %v4698_v12  ;;  %3832 = vmatprep.subr.bf16.mxu1 (!%p213_p9), %v4698_v12  ;;  %v4737_v23 = vpack.c.bf16 (!%p213_p9), %v257_v20, %v256_v19  ;;  %v4741_v24 = vpack.c.bf16 (!%p213_p9), %v275_v22, %v274_v21  ;;  %v259_v26 = vld [vmem:[%s5484_s3 + $0x38] sm:$0xff] (!%p213_p9)  ;;  %v276_v27 = vld [vmem:[%s5484_s3 + $0xc0] sm:$0xff] (!%p213_p9)  ;;  %v277_v28 = vld [vmem:[%s5484_s3 + $0xc8] sm:$0xff] (!%p213_p9)  ;;  %s4587_s29 = smov (!%p213_p9), 93   ;;  %s244_s30 = scalar_lea.vmem (!%p213_p9), [#allocation3], %s4717_s9 }
  0x21   : > { %v4760_v29 = vld [vmem:[%s4757_s7 + $0x8] sm:$0xff] (!%p213_p9)  ;;  %v260_v30 = vld [vmem:[%s5484_s3 + $0x40] sm:$0xff] (!%p213_p9)  ;;  %v4770_v32 = vpack.c.bf16 (!%p213_p9), %v259_v26, %v258_v25  ;;  %v278_v33 = vld [vmem:[%s5484_s3 + $0xd0] sm:$0xff] (!%p213_p9)  ;;  %v4780_v35 = vpack.c.bf16 (!%p213_p9), %v277_v28, %v276_v27 }
  0x22   : > { %v261_v31 = vld [vmem:[%s5484_s3 + $0x48] sm:$0xff] (!%p213_p9)  ;;  %350 = vmatprep.mubr.f32.mxu0 (!%p213_p9), %v4760_v29  ;;  %v279_v34 = vld [vmem:[%s5484_s3 + $0xd8] sm:$0xff] (!%p213_p9)  ;;  %v262_v36 = vld [vmem:[%s5484_s3 + $0x50] sm:$0xff] (!%p213_p9) }
  0x23   : > { %3802 = vmatpush3.bf16.msra.mxu0 %v4715_v17  ;;  %3834 = vmatpush3.bf16.msra.mxu1 %v4715_v17  ;;  %v263_v37 = vld [vmem:[%s5484_s3 + $0x58] sm:$0xff]  ;;  %v4790_v38 = vpack.c.bf16 %v261_v31, %v260_v30  ;;  %v280_v39 = vld [vmem:[%s5484_s3 + $0xe0] sm:$0xff]  ;;  %v281_v40 = vld [vmem:[%s5484_s3 + $0xe8] sm:$0xff]  ;;  %v4800_v41 = vpack.c.bf16 %v279_v34, %v278_v33  ;;  %s3132_s6 = sshll.u32 (%p4663_p5), %s3066_s4, 4 }
  0x24   : > { %3804 = vmatprep.subr.bf16.mxu0 %v4721_v18  ;;  %3836 = vmatprep.subr.bf16.mxu1 %v4721_v18  ;;  %v4804_v42 = vpack.c.bf16 %v263_v37, %v262_v36  ;;  %v4808_v43 = vpack.c.bf16 %v281_v40, %v280_v39  ;;  %v264_v44 = vld [vmem:[%s5484_s3 + $0x60] sm:$0xff]  ;;  %v265_v45 = vld [vmem:[%s5484_s3 + $0x68] sm:$0xff]  ;;  %v282_v46 = vld [vmem:[%s5484_s3 + $0xf0] sm:$0xff]  ;;  %s2986_s9 = scalar_lea.vmem (%p4663_p5), %s5486_s5, %s3132_s6 }
  0x25   : > { %v283_v47 = vld [vmem:[%s5484_s3 + $0xf8] sm:$0xff]  ;;  %v4824_v48 = vpack.c.bf16 %v265_v45, %v264_v44  ;;  %v266_v50 = vld [vmem:[%s5484_s3 + $0x70] sm:$0xff]  ;;  %v248_v53 = vld [vmem:[%s4757_s7] sm:$0xff] }
  0x26   : > { %v4828_v49 = vpack.c.bf16 %v283_v47, %v282_v46  ;;  %v267_v51 = vld [vmem:[%s5484_s3 + $0x78] sm:$0xff]  ;;  %v250_v55 = vld [vmem:[%s4757_s7 + $0x10] sm:$0xff]  ;;  %v4855_v63 = vld [vmem:[%s5483_s2] sm:$0xff] }
  0x27   : > { %3806 = vmatpush3.bf16.msra.mxu0 %v4737_v23  ;;  %3838 = vmatpush3.bf16.msra.mxu1 %v4737_v23  ;;  %v4838_v52 = vpack.c.bf16 %v267_v51, %v266_v50  ;;  %v251_v54 = vld [vmem:[%s4757_s7 + $0x18] sm:$0xff]  ;;  %v4877_v13 = vld [vmem:[%s5483_s2 + $0x8] sm:$0xff] }
  0x28   : > { %3808 = vmatprep.subr.bf16.mxu0 %v4741_v24  ;;  %3840 = vmatprep.subr.bf16.mxu1 %v4741_v24 }
  0x29   : > { %477 = vperm.xlu1 %4402, %v4877_v13  }
  0x2b   : > { %3810 = vmatpush3.bf16.msra.mxu0 %v4770_v32  ;;  %3842 = vmatpush3.bf16.msra.mxu1 %v4770_v32 }
  0x2c   : > { %3812 = vmatprep.subr.bf16.mxu0 %v4780_v35  ;;  %3844 = vmatprep.subr.bf16.mxu1 %v4780_v35 }
  0x2f   : > { %3814 = vmatpush3.bf16.msra.mxu0 %v4790_v38  ;;  %3846 = vmatpush3.bf16.msra.mxu1 %v4790_v38 }
  0x30   : > { %3816 = vmatprep.subr.bf16.mxu0 %v4800_v41  ;;  %3848 = vmatprep.subr.bf16.mxu1 %v4800_v41 }
  0x33   : > { %3818 = vmatpush3.bf16.msra.mxu0 %v4804_v42  ;;  %3850 = vmatpush3.bf16.msra.mxu1 %v4804_v42 }
  0x34   : > { %3820 = vmatprep.subr.bf16.mxu0 %v4808_v43  ;;  %3852 = vmatprep.subr.bf16.mxu1 %v4808_v43 }
  0x37   : > { %3822 = vmatpush3.bf16.msra.mxu0 %v4824_v48  ;;  %3854 = vmatpush3.bf16.msra.mxu1 %v4824_v48 }
  0x38   : > { %3824 = vmatprep.subr.bf16.mxu0 %v4828_v49  ;;  %3856 = vmatprep.subr.bf16.mxu1 %v4828_v49 }
  0x3b   : > { %3826 = vmatpush3.bf16.msra.mxu0 %v4838_v52  ;;  %3858 = vmatpush3.bf16.msra.mxu1 %v4838_v52 }
  0x3c   : > { %3860 = vmatprep.subr.bf16.mxu1 %v4684_v7 }
  0x3e   : > { %351 = vmatmul.mubr.f32.vlgmr.msra.gmra.mrb[0].mxu0 %v248_v53 }
  0x3f   : > { %355 = vmatprep.mubr.f32.mxu0 %v251_v54 }
  0x42   : > { %356 = vmatmul.mubr.f32.gmra.mrb[2].mxu0 %v250_v55 }
  0x43   : > { %553 = vmatprep.mubr.bf16.mxu0 %v4565_v56 }
  0xa8   : > { %v478_v30 = vpop.permute.xlu1 %477 }
 0x111   : > { %v3165_v57 = vpop.f32.mrb[0].mxu0 }
 0x112   : > { %v3166_v58 = vpop.f32.mrb[1].mxu0 }
 0x113   : > { %v3167_v59 = vadd.f32 %v3166_v58, %v3165_v57 }
 0x115   : > { %v3168_v60 = vpop.f32.mrb[2].mxu0  ;;  %363 = vperm.xlu0 %4401, %v3167_v59  }
 0x116   : > { %v3169_v61 = vpop.f32.mrb[3].mxu0 }
 0x117   : > { %v3170_v62 = vadd.f32 %v3169_v61, %v3168_v60 }
 0x119   : > { %368 = vperm.xlu0 %4401, %v3170_v62  }
 0x11d   : > { %472 = vperm.xlu0 %4401, %v4855_v63  }
 0x121   : > { %4403 = vset.pattern.permute.xlu0 %v4566_v14 }
 0x122   : > { %485 = vperm.xlu0 %4403, %v4855_v63  }
 0x194   : > { %v364_v0 = vpop.permute.xlu0 %363 }
 0x195   : > { %v371_v1 = vsub.f32 %v248_v53, %v364_v0  ;;  %v372_v2 = vsub.f32 %v4760_v29, %v364_v0  ;;  %v4567_v29 = vmov 2  }
 0x196   : > { %4406 = vset.pattern.permute.xlu0 %v4567_v29 }
 0x197   : > { %v375_v3 = vmul.f32 %v371_v1, %v371_v1  ;;  %v376_v4 = vmul.f32 %v372_v2, %v372_v2  ;;  %509 = vperm.xlu0 %4406, %v4877_v13  }
 0x198   : > { %v369_v5 = vpop.permute.xlu0 %368 }
 0x199   : > { %v373_v6 = vsub.f32 %v250_v55, %v369_v5  ;;  %v374_v8 = vsub.f32 %v251_v54, %v369_v5  ;;  %443 = vmatprep.mubr.f32.mxu1 %v376_v4 }
 0x19a   : > { %444 = vmatmul.mubr.f32.vlgmr.msra.gmra.mrb[0].mxu1 %v375_v3 }
 0x19b   : > { %v377_v9 = vmul.f32 %v373_v6, %v373_v6  ;;  %v378_v10 = vmul.f32 %v374_v8, %v374_v8  ;;  %3862 = vmatpush3.bf16.msra.mxu1 %v4696_v11  ;;  %4409 = vset.pattern.permute.xlu0 %v4565_v56 }
 0x19c   : > { %3864 = vmatprep.subr.bf16.mxu1 %v4698_v12  ;;  %v473_v33 = vpop.permute.xlu0 %472 }
 0x19d   : > { %448 = vmatprep.mubr.f32.mxu1 %v378_v10 }
 0x19e   : > { %449 = vmatmul.mubr.f32.gmra.mrb[2].mxu1 %v377_v9 }
 0x19f   : > { %3866 = vmatpush3.bf16.msra.mxu1 %v4715_v17 }
 0x1a0   : > { %3868 = vmatprep.subr.bf16.mxu1 %v4721_v18 }
 0x1a1   : > { %v486_v46 = vpop.permute.xlu0 %485 }
 0x1a3   : > { %3870 = vmatpush3.bf16.msra.mxu1 %v4737_v23 }
 0x1a4   : > { %3872 = vmatprep.subr.bf16.mxu1 %v4741_v24 }
 0x1a7   : > { %3874 = vmatpush3.bf16.msra.mxu1 %v4770_v32 }
 0x1a8   : > { %3876 = vmatprep.subr.bf16.mxu1 %v4780_v35 }
 0x1ab   : > { %3878 = vmatpush3.bf16.msra.mxu1 %v4790_v38 }
 0x1ac   : > { %3880 = vmatprep.subr.bf16.mxu1 %v4800_v41 }
 0x1af   : > { %3882 = vmatpush3.bf16.msra.mxu1 %v4804_v42 }
 0x1b0   : > { %3884 = vmatprep.subr.bf16.mxu1 %v4808_v43 }
 0x1b3   : > { %3886 = vmatpush3.bf16.msra.mxu1 %v4824_v48 }
 0x1b4   : > { %3888 = vmatprep.subr.bf16.mxu1 %v4828_v49 }
 0x1b7   : > { %3890 = vmatpush3.bf16.msra.mxu1 %v4838_v52 }
 0x216   : > { %v510_v5 = vpop.permute.xlu0 %509 }
 0x26d   : > { %v3203_v15 = vpop.f32.mrb[0].mxu1 }
 0x26e   : > { %v3204_v16 = vpop.f32.mrb[1].mxu1 }
 0x26f   : > { %v3205_v19 = vadd.f32 %v3204_v16, %v3203_v15 }
 0x271   : > { %v446_v20 = vadd.f32 0.001, %v3205_v19  ;;  %v3206_v21 = vpop.f32.mrb[2].mxu1 }
 0x272   : > { %v3207_v22 = vpop.f32.mrb[3].mxu1 }
 0x273   : > { %4485 = vrsqrt.f32 %v446_v20  ;;  %v3208_v25 = vadd.f32 %v3207_v22, %v3206_v21 }
 0x275   : > { %v451_v26 = vadd.f32 0.001, %v3208_v25 }
 0x277   : > { %4487 = vrsqrt.f32 %v451_v26 }
 0x27d   : > { %v4486_v27 = vpop.eup %4485 }
 0x27e   : > { %458 = vperm.xlu1 %4402, %v4486_v27  }
 0x281   : > { %v4488_v28 = vpop.eup %4487 }
 0x282   : > { %463 = vperm.xlu1 %4402, %v4488_v28  }
 0x286   : > { %4404 = vset.pattern.permute.xlu1 %v4566_v14 }
 0x287   : > { %489 = vperm.xlu1 %4404, %v4877_v13  }
 0x28b   : > { %4405 = vset.pattern.permute.xlu1 %v4567_v29 }
 0x28c   : > { %505 = vperm.xlu1 %4405, %v4855_v63  }
 0x290   : > { %4407 = vset.pattern.permute.xlu1 %v4565_v56 }
 0x2fd   : > { %v459_v31 = vpop.permute.xlu1 %458 }
 0x2fe   : > { %v466_v34 = vmul.f32 %v459_v31, %v371_v1  ;;  %v467_v36 = vmul.f32 %v459_v31, %v372_v2  ;;  %v4473_v1 = vld [vmem:[%s5482_s1] sm:$0xff]  }
 0x300   : > { %v480_v39 = vmul.f32 %v473_v33, %v466_v34  ;;  %v481_v40 = vmul.f32 %v473_v33, %v467_v36 }
 0x301   : > { %v464_v37 = vpop.permute.xlu1 %463 }
 0x302   : > { %v468_v44 = vmul.f32 %v464_v37, %v373_v6  ;;  %v469_v45 = vmul.f32 %v464_v37, %v374_v8  ;;  %v492_v51 = vadd.f32 %v486_v46, %v480_v39  ;;  %v493_v53 = vadd.f32 %v486_v46, %v481_v40 }
 0x303   : > { %v4568_v39 = vmov 3   ;;  %v4569_v40 = vmov 4  }
 0x304   : > { %v482_v47 = vmul.f32 %v478_v30, %v468_v44  ;;  %v483_v50 = vmul.f32 %v478_v30, %v469_v45  ;;  %v496_v58 = vmax.f32 %v492_v51, 0.0  ;;  %v497_v59 = vmax.f32 %v493_v53, 0.0 }
 0x306   : > { %v490_v54 = vpop.permute.xlu1 %489 }
 0x307   : > { %v494_v55 = vadd.f32 %v490_v54, %v482_v47  ;;  %v495_v57 = vadd.f32 %v490_v54, %v483_v50 }
 0x309   : > { %v498_v60 = vmax.f32 %v494_v55, 0.0  ;;  %v499_v61 = vmax.f32 %v495_v57, 0.0 }
 0x30b   : > { %v502_v62 = vpack.c.bf16 %v498_v60, %v496_v58  ;;  %v503_v0 = vpack.c.bf16 %v499_v61, %v497_v59  ;;  %v506_v2 = vpop.permute.xlu1 %505  ;;  %v4570_v58 = vmov 5  }
 0x30d   : > { %521 = vmatprep.subr.bf16.mxu0 %v503_v0 }
 0x30e   : > { %522 = vmatpush1.bf16.msra.mxu0 %v502_v62 }
 0x30f   : > { %3892 = vmatprep.subr.bf16.mxu0 %v4684_v7 }
 0x311   : > { %3077 = vmatmul.mubr.msk.bf16.vlgmr.msra.gmra.mrb[4].mxu0 %vm517_vm0, %v4473_v1 }
 0x312   : > { %3894 = vmatpush3.bf16.msra.mxu0 %v4696_v11 }
 0x313   : > { %3896 = vmatprep.subr.bf16.mxu0 %v4698_v12 }
 0x316   : > { %3898 = vmatpush3.bf16.msra.mxu0 %v4715_v17 }
 0x317   : > { %3900 = vmatprep.subr.bf16.mxu0 %v4721_v18 }
 0x31a   : > { %3902 = vmatpush3.bf16.msra.mxu0 %v4737_v23 }
 0x31b   : > { %3904 = vmatprep.subr.bf16.mxu0 %v4741_v24 }
 0x31e   : > { %3906 = vmatpush3.bf16.msra.mxu0 %v4770_v32 }
 0x31f   : > { %3908 = vmatprep.subr.bf16.mxu0 %v4780_v35 }
 0x322   : > { %3910 = vmatpush3.bf16.msra.mxu0 %v4790_v38 }
 0x323   : > { %3912 = vmatprep.subr.bf16.mxu0 %v4800_v41 }
 0x326   : > { %3914 = vmatpush3.bf16.msra.mxu0 %v4804_v42 }
 0x327   : > { %3916 = vmatprep.subr.bf16.mxu0 %v4808_v43 }
 0x32a   : > { %3918 = vmatpush3.bf16.msra.mxu0 %v4824_v48 }
 0x32b   : > { %3920 = vmatprep.subr.bf16.mxu0 %v4828_v49 }
 0x32e   : > { %3922 = vmatpush3.bf16.msra.mxu0 %v4838_v52 }
 0x32f   : > { %3924 = vmatprep.subr.bf16.mxu0 %v4684_v7 }
 0x3e4   : > { %v555_v3 = vpop.f32.mrb[4].mxu0 }
 0x3e5   : > { %v557_v4 = vpop.f32.mrb[5].mxu0  ;;  %v4909_v9 = vadd.f32 %v555_v3, %v506_v2 }
 0x3e6   : > { %v4907_v6 = vadd.f32 %v557_v4, %v506_v2  ;;  %v559_v8 = vpop.f32.mrb[6].mxu0 }
 0x3e7   : > { %v561_v10 = vpop.f32.mrb[7].mxu0  ;;  %v4916_v15 = vadd.f32 %v559_v8, %v510_v5 }
 0x3e8   : > { %v4911_v14 = vadd.f32 %v561_v10, %v510_v5  ;;  %628 = vmatprep.mubr.f32.mxu1 %v4907_v6 }
 0x3e9   : > { %629 = vmatmul.mubr.f32.vlgmr.msra.gmra.mrb[4].mxu1 %v4909_v9 }
 0x3ea   : > { %633 = vmatprep.mubr.f32.mxu1 %v4911_v14 }
 0x3ed   : > { %634 = vmatmul.mubr.f32.gmra.mrb[6].mxu1 %v4916_v15 }
 0x3ee   : > { %829 = vmatprep.mubr.bf16.mxu1 %v4565_v56 }
 0x4bc   : > { %v3241_v16 = vpop.f32.mrb[4].mxu1 }
 0x4bd   : > { %v3242_v19 = vpop.f32.mrb[5].mxu1 }
 0x4be   : > { %v3243_v20 = vadd.f32 %v3242_v19, %v3241_v16 }
 0x4c0   : > { %641 = vperm.xlu1 %4407, %v3243_v20   ;;  %v3244_v21 = vpop.f32.mrb[6].mxu1 }
 0x4c1   : > { %v3245_v22 = vpop.f32.mrb[7].mxu1 }
 0x4c2   : > { %v3246_v25 = vadd.f32 %v3245_v22, %v3244_v21 }
 0x4c4   : > { %646 = vperm.xlu1 %4407, %v3246_v25  }
 0x4c8   : > { %4408 = vset.pattern.permute.xlu1 %v4568_v39 }
 0x4c9   : > { %749 = vperm.xlu1 %4408, %v4855_v63  }
 0x4cd   : > { %4411 = vset.pattern.permute.xlu1 %v4569_v40 }
 0x4ce   : > { %761 = vperm.xlu1 %4411, %v4855_v63  }
 0x4d2   : > { %4412 = vset.pattern.permute.xlu1 %v4565_v56 }
 0x53f   : > { %v642_v26 = vpop.permute.xlu1 %641 }
 0x540   : > { %v4921_v27 = vsub.f32 %v4909_v9, %v642_v26  ;;  %v4924_v28 = vsub.f32 %v4907_v6, %v642_v26 }
 0x542   : > { %v653_v29 = vmul.f32 %v4921_v27, %v4921_v27  ;;  %v654_v30 = vmul.f32 %v4924_v28, %v4924_v28 }
 0x543   : > { %v647_v31 = vpop.permute.xlu1 %646 }
 0x544   : > { %v4931_v33 = vsub.f32 %v4916_v15, %v647_v31  ;;  %v4934_v34 = vsub.f32 %v4911_v14, %v647_v31  ;;  %721 = vmatprep.mubr.f32.mxu0 %v654_v30 }
 0x545   : > { %722 = vmatmul.mubr.f32.vlgmr.msra.gmra.mrb[8].mxu0 %v653_v29 }
 0x546   : > { %v656_v36 = vmul.f32 %v4934_v34, %v4934_v34  ;;  %v655_v37 = vmul.f32 %v4931_v33, %v4931_v33  ;;  %3926 = vmatpush3.bf16.msra.mxu0 %v4696_v11 }
 0x547   : > { %3928 = vmatprep.subr.bf16.mxu0 %v4698_v12 }
 0x548   : > { %726 = vmatprep.mubr.f32.mxu0 %v656_v36  ;;  %v750_v59 = vpop.permute.xlu1 %749 }
 0x549   : > { %727 = vmatmul.mubr.f32.gmra.mrb[10].mxu0 %v655_v37 }
 0x54a   : > { %3930 = vmatpush3.bf16.msra.mxu0 %v4715_v17 }
 0x54b   : > { %3932 = vmatprep.subr.bf16.mxu0 %v4721_v18 }
 0x54d   : > { %v762_v60 = vpop.permute.xlu1 %761 }
 0x54e   : > { %3934 = vmatpush3.bf16.msra.mxu0 %v4737_v23 }
 0x54f   : > { %3936 = vmatprep.subr.bf16.mxu0 %v4741_v24 }
 0x552   : > { %3938 = vmatpush3.bf16.msra.mxu0 %v4770_v32 }
 0x553   : > { %3940 = vmatprep.subr.bf16.mxu0 %v4780_v35 }
 0x556   : > { %3942 = vmatpush3.bf16.msra.mxu0 %v4790_v38 }
 0x557   : > { %3944 = vmatprep.subr.bf16.mxu0 %v4800_v41 }
 0x55a   : > { %3946 = vmatpush3.bf16.msra.mxu0 %v4804_v42 }
 0x55b   : > { %3948 = vmatprep.subr.bf16.mxu0 %v4808_v43 }
 0x55e   : > { %3950 = vmatpush3.bf16.msra.mxu0 %v4824_v48 }
 0x55f   : > { %3952 = vmatprep.subr.bf16.mxu0 %v4828_v49 }
 0x562   : > { %3954 = vmatpush3.bf16.msra.mxu0 %v4838_v52 }
 0x618   : > { %v3279_v44 = vpop.f32.mrb[8].mxu0 }
 0x619   : > { %v3280_v45 = vpop.f32.mrb[9].mxu0 }
 0x61a   : > { %v3281_v46 = vadd.f32 %v3280_v45, %v3279_v44 }
 0x61c   : > { %v724_v47 = vadd.f32 0.001, %v3281_v46  ;;  %v3282_v50 = vpop.f32.mrb[10].mxu0 }
 0x61d   : > { %v3283_v51 = vpop.f32.mrb[11].mxu0 }
 0x61e   : > { %4489 = vrsqrt.f32 %v724_v47  ;;  %v3284_v53 = vadd.f32 %v3283_v51, %v3282_v50 }
 0x620   : > { %v729_v54 = vadd.f32 0.001, %v3284_v53 }
 0x622   : > { %4491 = vrsqrt.f32 %v729_v54 }
 0x628   : > { %v4490_v55 = vpop.eup %4489 }
 0x629   : > { %736 = vperm.xlu0 %4409, %v4490_v55  }
 0x62c   : > { %v4492_v57 = vpop.eup %4491 }
 0x62d   : > { %741 = vperm.xlu1 %4412, %v4492_v57   ;;  %4410 = vset.pattern.permute.xlu0 %v4568_v39 }
 0x62e   : > { %753 = vperm.xlu0 %4410, %v4877_v13  }
 0x631   : > { %4413 = vset.pattern.permute.xlu1 %v4569_v40 }
 0x632   : > { %765 = vperm.xlu1 %4413, %v4877_v13   ;;  %4414 = vset.pattern.permute.xlu0 %v4570_v58 }
 0x633   : > { %782 = vperm.xlu0 %4414, %v4855_v63  }
 0x636   : > { %4415 = vset.pattern.permute.xlu1 %v4570_v58 }
 0x637   : > { %786 = vperm.xlu1 %4415, %v4877_v13   ;;  %4417 = vset.pattern.permute.xlu0 %v4565_v56 }
 0x63b   : > { %4416 = vset.pattern.permute.xlu1 %v4565_v56 }
 0x6a8   : > { %v737_v61 = vpop.permute.xlu0 %736 }
 0x6a9   : > { %v744_v62 = vmul.f32 %v737_v61, %v4921_v27  ;;  %v745_v0 = vmul.f32 %v737_v61, %v4924_v28 }
 0x6ab   : > { %v756_v1 = vmul.f32 %v750_v59, %v744_v62  ;;  %v757_v2 = vmul.f32 %v750_v59, %v745_v0 }
 0x6ac   : > { %v742_v3 = vpop.permute.xlu1 %741 }
 0x6ad   : > { %v746_v4 = vmul.f32 %v742_v3, %v4931_v33  ;;  %v747_v5 = vmul.f32 %v742_v3, %v4934_v34  ;;  %v754_v8 = vpop.permute.xlu0 %753  ;;  %v768_v19 = vadd.f32 %v762_v60, %v756_v1  ;;  %v769_v20 = vadd.f32 %v762_v60, %v757_v2  ;;  %v4474_v33 = vld [vmem:[%s5482_s1 + $0x8] sm:$0xff]  }
 0x6af   : > { %v758_v10 = vmul.f32 %v754_v8, %v746_v4  ;;  %v759_v16 = vmul.f32 %v754_v8, %v747_v5  ;;  %v772_v26 = vmax.f32 %v768_v19, 0.0  ;;  %v773_v30 = vmax.f32 %v769_v20, 0.0 }
 0x6b0   : > { %v4571_v8 = vmov 6  }
 0x6b1   : > { %v766_v21 = vpop.permute.xlu1 %765 }
 0x6b2   : > { %v770_v22 = vadd.f32 %v766_v21, %v758_v10  ;;  %v771_v25 = vadd.f32 %v766_v21, %v759_v16  ;;  %v783_v34 = vpop.permute.xlu0 %782  ;;  %v4572_v10 = vmov 7  }
 0x6b4   : > { %v774_v29 = vmax.f32 %v770_v22, 0.0  ;;  %v775_v27 = vmax.f32 %v771_v25, 0.0 }
 0x6b6   : > { %v779_v28 = vpack.c.bf16 %v774_v29, %v772_v26  ;;  %v780_v31 = vpack.c.bf16 %v775_v27, %v773_v30  ;;  %v787_v39 = vpop.permute.xlu1 %786 }
 0x6b8   : > { %797 = vmatprep.subr.bf16.mxu1 %v780_v31 }
 0x6b9   : > { %798 = vmatpush1.bf16.msra.mxu1 %v779_v28  ;;  %v4573_v28 = vmov 8  }
 0x6ba   : > { %3956 = vmatprep.subr.bf16.mxu1 %v4684_v7 }
 0x6bc   : > { %3081 = vmatmul.mubr.msk.bf16.vlgmr.msra.gmra.mrb[8].mxu1 %vm517_vm0, %v4474_v33 }
 0x6bd   : > { %3958 = vmatpush3.bf16.msra.mxu1 %v4696_v11 }
 0x6be   : > { %3960 = vmatprep.subr.bf16.mxu1 %v4698_v12 }
 0x6c1   : > { %3962 = vmatpush3.bf16.msra.mxu1 %v4715_v17 }
 0x6c2   : > { %3964 = vmatprep.subr.bf16.mxu1 %v4721_v18 }
 0x6c5   : > { %3966 = vmatpush3.bf16.msra.mxu1 %v4737_v23 }
 0x6c6   : > { %3968 = vmatprep.subr.bf16.mxu1 %v4741_v24 }
 0x6c9   : > { %3970 = vmatpush3.bf16.msra.mxu1 %v4770_v32 }
 0x6ca   : > { %3972 = vmatprep.subr.bf16.mxu1 %v4780_v35 }
 0x6cd   : > { %3974 = vmatpush3.bf16.msra.mxu1 %v4790_v38 }
 0x6ce   : > { %3976 = vmatprep.subr.bf16.mxu1 %v4800_v41 }
 0x6d1   : > { %3978 = vmatpush3.bf16.msra.mxu1 %v4804_v42 }
 0x6d2   : > { %3980 = vmatprep.subr.bf16.mxu1 %v4808_v43 }
 0x6d5   : > { %3982 = vmatpush3.bf16.msra.mxu1 %v4824_v48 }
 0x6d6   : > { %3984 = vmatprep.subr.bf16.mxu1 %v4828_v49 }
 0x6d9   : > { %3986 = vmatpush3.bf16.msra.mxu1 %v4838_v52 }
 0x6da   : > { %3988 = vmatprep.subr.bf16.mxu1 %v4684_v7 }
 0x78f   : > { %v831_v36 = vpop.f32.mrb[8].mxu1 }
 0x790   : > { %v833_v37 = vpop.f32.mrb[9].mxu1  ;;  %v4991_v45 = vadd.f32 %v831_v36, %v783_v34 }
 0x791   : > { %v4989_v40 = vadd.f32 %v833_v37, %v783_v34  ;;  %v835_v44 = vpop.f32.mrb[10].mxu1 }
 0x792   : > { %v837_v46 = vpop.f32.mrb[11].mxu1  ;;  %v4998_v50 = vadd.f32 %v835_v44, %v787_v39 }
 0x793   : > { %v4993_v47 = vadd.f32 %v837_v46, %v787_v39  ;;  %908 = vmatprep.mubr.f32.mxu0 %v4989_v40 }
 0x794   : > { %909 = vmatmul.mubr.f32.vlgmr.msra.gmra.mrb[12].mxu0 %v4991_v45 }
 0x795   : > { %913 = vmatprep.mubr.f32.mxu0 %v4993_v47 }
 0x798   : > { %914 = vmatmul.mubr.f32.gmra.mrb[14].mxu0 %v4998_v50 }
 0x799   : > { %1109 = vmatprep.mubr.bf16.mxu0 %v4565_v56 }
 0x867   : > { %v3317_v51 = vpop.f32.mrb[12].mxu0 }
 0x868   : > { %v3318_v53 = vpop.f32.mrb[13].mxu0 }
 0x869   : > { %v3319_v54 = vadd.f32 %v3318_v53, %v3317_v51 }
 0x86b   : > { %v3320_v55 = vpop.f32.mrb[14].mxu0  ;;  %921 = vperm.xlu1 %4416, %v3319_v54  }
 0x86c   : > { %v3321_v57 = vpop.f32.mrb[15].mxu0 }
 0x86d   : > { %v3322_v58 = vadd.f32 %v3321_v57, %v3320_v55 }
 0x86f   : > { %926 = vperm.xlu0 %4417, %v3322_v58   ;;  %4419 = vset.pattern.permute.xlu1 %v4571_v8 }
 0x870   : > { %1033 = vperm.xlu1 %4419, %v4877_v13  }
 0x873   : > { %4418 = vset.pattern.permute.xlu0 %v4571_v8 }
 0x874   : > { %1029 = vperm.xlu0 %4418, %v4855_v63   ;;  %4420 = vset.pattern.permute.xlu1 %v4565_v56 }
 0x878   : > { %4422 = vset.pattern.permute.xlu0 %v4572_v10 }
 0x879   : > { %1045 = vperm.xlu0 %4422, %v4877_v13  }
 0x87d   : > { %4424 = vset.pattern.permute.xlu0 %v4565_v56 }
 0x8ea   : > { %v922_v59 = vpop.permute.xlu1 %921 }
 0x8eb   : > { %v929_v60 = vsub.f32 %v4991_v45, %v922_v59  ;;  %v930_v61 = vsub.f32 %v4989_v40, %v922_v59 }
 0x8ed   : > { %v933_v62 = vmul.f32 %v929_v60, %v929_v60  ;;  %v934_v0 = vmul.f32 %v930_v61, %v930_v61 }
 0x8ee   : > { %v927_v1 = vpop.permute.xlu0 %926 }
 0x8ef   : > { %v931_v2 = vsub.f32 %v4998_v50, %v927_v1  ;;  %v932_v3 = vsub.f32 %v4993_v47, %v927_v1  ;;  %1001 = vmatprep.mubr.f32.mxu1 %v934_v0  ;;  %v1034_v31 = vpop.permute.xlu1 %1033 }
 0x8f0   : > { %1002 = vmatmul.mubr.f32.vlgmr.msra.gmra.mrb[12].mxu1 %v933_v62 }
 0x8f1   : > { %v935_v4 = vmul.f32 %v931_v2, %v931_v2  ;;  %v936_v5 = vmul.f32 %v932_v3, %v932_v3  ;;  %3990 = vmatpush3.bf16.msra.mxu1 %v4696_v11 }
 0x8f2   : > { %3992 = vmatprep.subr.bf16.mxu1 %v4698_v12 }
 0x8f3   : > { %1006 = vmatprep.mubr.f32.mxu1 %v936_v5  ;;  %v1030_v34 = vpop.permute.xlu0 %1029 }
 0x8f4   : > { %1007 = vmatmul.mubr.f32.gmra.mrb[14].mxu1 %v935_v4 }
 0x8f5   : > { %3994 = vmatpush3.bf16.msra.mxu1 %v4715_v17 }
 0x8f6   : > { %3996 = vmatprep.subr.bf16.mxu1 %v4721_v18 }
 0x8f8   : > { %v1046_v51 = vpop.permute.xlu0 %1045 }
 0x8f9   : > { %3998 = vmatpush3.bf16.msra.mxu1 %v4737_v23 }
 0x8fa   : > { %4000 = vmatprep.subr.bf16.mxu1 %v4741_v24 }
 0x8fd   : > { %4002 = vmatpush3.bf16.msra.mxu1 %v4770_v32 }
 0x8fe   : > { %4004 = vmatprep.subr.bf16.mxu1 %v4780_v35 }
 0x901   : > { %4006 = vmatpush3.bf16.msra.mxu1 %v4790_v38 }
 0x902   : > { %4008 = vmatprep.subr.bf16.mxu1 %v4800_v41 }
 0x905   : > { %4010 = vmatpush3.bf16.msra.mxu1 %v4804_v42 }
 0x906   : > { %4012 = vmatprep.subr.bf16.mxu1 %v4808_v43 }
 0x909   : > { %4014 = vmatpush3.bf16.msra.mxu1 %v4824_v48 }
 0x90a   : > { %4016 = vmatprep.subr.bf16.mxu1 %v4828_v49 }
 0x90d   : > { %4018 = vmatpush3.bf16.msra.mxu1 %v4838_v52 }
 0x9c3   : > { %v3355_v16 = vpop.f32.mrb[12].mxu1 }
 0x9c4   : > { %v3356_v19 = vpop.f32.mrb[13].mxu1 }
 0x9c5   : > { %v3357_v20 = vadd.f32 %v3356_v19, %v3355_v16 }
 0x9c7   : > { %v1004_v21 = vadd.f32 0.001, %v3357_v20  ;;  %v3358_v22 = vpop.f32.mrb[14].mxu1 }
 0x9c8   : > { %v3359_v25 = vpop.f32.mrb[15].mxu1 }
 0x9c9   : > { %4493 = vrsqrt.f32 %v1004_v21  ;;  %v3360_v26 = vadd.f32 %v3359_v25, %v3358_v22 }
 0x9cb   : > { %v1009_v29 = vadd.f32 0.001, %v3360_v26 }
 0x9cd   : > { %4495 = vrsqrt.f32 %v1009_v29 }
 0x9d3   : > { %v4494_v27 = vpop.eup %4493 }
 0x9d4   : > { %1016 = vperm.xlu1 %4420, %v4494_v27  }
 0x9d7   : > { %v4496_v30 = vpop.eup %4495 }
 0x9d8   : > { %1021 = vperm.xlu1 %4420, %v4496_v30  }
 0x9dc   : > { %4421 = vset.pattern.permute.xlu1 %v4572_v10 }
 0x9dd   : > { %1041 = vperm.xlu1 %4421, %v4855_v63  }
 0x9e1   : > { %4423 = vset.pattern.permute.xlu1 %v4573_v28 }
 0x9e2   : > { %1062 = vperm.xlu1 %4423, %v4855_v63  }
 0x9e6   : > { %1066 = vperm.xlu1 %4423, %v4877_v13  }
 0x9ea   : > { %4425 = vset.pattern.permute.xlu1 %v4565_v56 }
 0xa53   : > { %v1017_v33 = vpop.permute.xlu1 %1016 }
 0xa54   : > { %v1024_v36 = vmul.f32 %v1017_v33, %v929_v60  ;;  %v1025_v37 = vmul.f32 %v1017_v33, %v930_v61  ;;  %v4475_v61 = vld [vmem:[%s5482_s1 + $0x10] sm:$0xff]  }
 0xa56   : > { %v1036_v55 = vmul.f32 %v1030_v34, %v1024_v36  ;;  %v1037_v57 = vmul.f32 %v1030_v34, %v1025_v37 }
 0xa57   : > { %v1022_v39 = vpop.permute.xlu1 %1021 }
 0xa58   : > { %v1026_v44 = vmul.f32 %v1022_v39, %v931_v2  ;;  %v1027_v46 = vmul.f32 %v1022_v39, %v932_v3 }
 0xa5a   : > { %v1038_v53 = vmul.f32 %v1034_v31, %v1026_v44  ;;  %v1039_v54 = vmul.f32 %v1034_v31, %v1027_v46 }
 0xa5c   : > { %v1050_v58 = vadd.f32 %v1046_v51, %v1038_v53  ;;  %v1051_v59 = vadd.f32 %v1046_v51, %v1039_v54  ;;  %v1042_v62 = vpop.permute.xlu1 %1041 }
 0xa5d   : > { %v1048_v0 = vadd.f32 %v1042_v62, %v1036_v55  ;;  %v1049_v1 = vadd.f32 %v1042_v62, %v1037_v57 }
 0xa5e   : > { %v1054_v4 = vmax.f32 %v1050_v58, 0.0  ;;  %v1055_v5 = vmax.f32 %v1051_v59, 0.0  ;;  %v4574_v59 = vmov 9  }
 0xa5f   : > { %v1052_v8 = vmax.f32 %v1048_v0, 0.0  ;;  %v1053_v10 = vmax.f32 %v1049_v1, 0.0 }
 0xa61   : > { %v1059_v16 = vpack.c.bf16 %v1054_v4, %v1052_v8  ;;  %v1060_v60 = vpack.c.bf16 %v1055_v5, %v1053_v10  ;;  %v1063_v2 = vpop.permute.xlu1 %1062 }
 0xa63   : > { %1077 = vmatprep.subr.bf16.mxu0 %v1060_v60 }
 0xa64   : > { %1078 = vmatpush1.bf16.msra.mxu0 %v1059_v16 }
 0xa65   : > { %4020 = vmatprep.subr.bf16.mxu0 %v4684_v7  ;;  %v1067_v25 = vpop.permute.xlu1 %1066 }
 0xa67   : > { %3085 = vmatmul.mubr.msk.bf16.vlgmr.msra.gmra.mrb[16].mxu0 %vm517_vm0, %v4475_v61 }
 0xa68   : > { %4022 = vmatpush3.bf16.msra.mxu0 %v4696_v11 }
 0xa69   : > { %4024 = vmatprep.subr.bf16.mxu0 %v4698_v12 }
 0xa6c   : > { %4026 = vmatpush3.bf16.msra.mxu0 %v4715_v17 }
 0xa6d   : > { %4028 = vmatprep.subr.bf16.mxu0 %v4721_v18 }
 0xa70   : > { %4030 = vmatpush3.bf16.msra.mxu0 %v4737_v23 }
 0xa71   : > { %4032 = vmatprep.subr.bf16.mxu0 %v4741_v24 }
 0xa74   : > { %4034 = vmatpush3.bf16.msra.mxu0 %v4770_v32 }
 0xa75   : > { %4036 = vmatprep.subr.bf16.mxu0 %v4780_v35 }
 0xa78   : > { %4038 = vmatpush3.bf16.msra.mxu0 %v4790_v38 }
 0xa79   : > { %4040 = vmatprep.subr.bf16.mxu0 %v4800_v41 }
 0xa7c   : > { %4042 = vmatpush3.bf16.msra.mxu0 %v4804_v42 }
 0xa7d   : > { %4044 = vmatprep.subr.bf16.mxu0 %v4808_v43 }
 0xa80   : > { %4046 = vmatpush3.bf16.msra.mxu0 %v4824_v48 }
 0xa81   : > { %4048 = vmatprep.subr.bf16.mxu0 %v4828_v49 }
 0xa84   : > { %4050 = vmatpush3.bf16.msra.mxu0 %v4838_v52 }
 0xb3a   : > { %v1111_v3 = vpop.f32.mrb[16].mxu0 }
 0xb3b   : > { %v1113_v19 = vpop.f32.mrb[17].mxu0  ;;  %v5052_v22 = vadd.f32 %v1111_v3, %v1063_v2  ;;  %v4576_v3 = vmov 11  }
 0xb3c   : > { %v5050_v20 = vadd.f32 %v1113_v19, %v1063_v2  ;;  %v1115_v21 = vpop.f32.mrb[18].mxu0  ;;  %v4575_v2 = vmov 10  }
 0xb3d   : > { %v1117_v26 = vpop.f32.mrb[19].mxu0  ;;  %v5059_v27 = vadd.f32 %v1115_v21, %v1067_v25 }
 0xb3e   : > { %v5054_v29 = vadd.f32 %v1117_v26, %v1067_v25  ;;  %1188 = vmatprep.mubr.f32.mxu1 %v5050_v20 }
 0xb3f   : > { %1189 = vmatmul.mubr.f32.vlgmr.msra.gmra.mrb[16].mxu1 %v5052_v22 }
 0xb40   : > { %1193 = vmatprep.mubr.f32.mxu1 %v5054_v29 }
 0xb43   : > { %1194 = vmatmul.mubr.f32.gmra.mrb[18].mxu1 %v5059_v27 }
 0xb44   : > { %1389 = vmatprep.mubr.bf16.mxu1 %v4565_v56 }
 0xc12   : > { %v3393_v30 = vpop.f32.mrb[16].mxu1 }
 0xc13   : > { %v3394_v28 = vpop.f32.mrb[17].mxu1 }
 0xc14   : > { %v3395_v31 = vadd.f32 %v3394_v28, %v3393_v30 }
 0xc16   : > { %1201 = vperm.xlu0 %4424, %v3395_v31   ;;  %v3396_v33 = vpop.f32.mrb[18].mxu1 }
 0xc17   : > { %v3397_v34 = vpop.f32.mrb[19].mxu1 }
 0xc18   : > { %v3398_v36 = vadd.f32 %v3397_v34, %v3396_v33 }
 0xc1a   : > { %1206 = vperm.xlu1 %4425, %v3398_v36  }
 0xc1e   : > { %4426 = vset.pattern.permute.xlu1 %v4574_v59 }
 0xc1f   : > { %1309 = vperm.xlu1 %4426, %v4855_v63  }
 0xc23   : > { %4427 = vset.pattern.permute.xlu1 %v4565_v56 }
 0xc95   : > { %v1202_v37 = vpop.permute.xlu0 %1201 }
 0xc96   : > { %v1209_v39 = vsub.f32 %v5052_v22, %v1202_v37  ;;  %v1210_v44 = vsub.f32 %v5050_v20, %v1202_v37 }
 0xc98   : > { %v1213_v46 = vmul.f32 %v1209_v39, %v1209_v39  ;;  %v1214_v51 = vmul.f32 %v1210_v44, %v1210_v44 }
 0xc99   : > { %v1207_v53 = vpop.permute.xlu1 %1206 }
 0xc9a   : > { %v1211_v54 = vsub.f32 %v5059_v27, %v1207_v53  ;;  %v1212_v55 = vsub.f32 %v5054_v29, %v1207_v53  ;;  %1281 = vmatprep.mubr.f32.mxu0 %v1214_v51 }
 0xc9b   : > { %1282 = vmatmul.mubr.f32.vlgmr.msra.gmra.mrb[20].mxu0 %v1213_v46 }
 0xc9c   : > { %v1215_v57 = vmul.f32 %v1211_v54, %v1211_v54  ;;  %v1216_v58 = vmul.f32 %v1212_v55, %v1212_v55 }
 0xc9e   : > { %1286 = vmatprep.mubr.f32.mxu0 %v1216_v58  ;;  %v1310_v19 = vpop.permute.xlu1 %1309 }
 0xc9f   : > { %1287 = vmatmul.mubr.f32.gmra.mrb[22].mxu0 %v1215_v57 }
 0xca0   : > { %1457 = vmatprep.mubr.bf16.mxu0 %v4565_v56 }
 0xd6e   : > { %v3431_v62 = vpop.f32.mrb[20].mxu0 }
 0xd6f   : > { %v3432_v0 = vpop.f32.mrb[21].mxu0 }
 0xd70   : > { %v3433_v1 = vadd.f32 %v3432_v0, %v3431_v62 }
 0xd72   : > { %v1284_v4 = vadd.f32 0.001, %v3433_v1  ;;  %v3434_v5 = vpop.f32.mrb[22].mxu0 }
 0xd73   : > { %v3435_v8 = vpop.f32.mrb[23].mxu0 }
 0xd74   : > { %4497 = vrsqrt.f32 %v1284_v4  ;;  %v3436_v10 = vadd.f32 %v3435_v8, %v3434_v5  ;;  %v4578_v8 = vmov 25  }
 0xd76   : > { %v1289_v16 = vadd.f32 0.001, %v3436_v10  ;;  %v4579_v10 = vmov 26  }
 0xd78   : > { %4499 = vrsqrt.f32 %v1289_v16 }
 0xd7e   : > { %v4498_v60 = vpop.eup %4497 }
 0xd7f   : > { %1296 = vperm.xlu1 %4427, %v4498_v60  }
 0xd82   : > { %v4500_v61 = vpop.eup %4499 }
 0xd83   : > { %4429 = vset.pattern.permute.xlu1 %v4575_v2  ;;  %1301 = vperm.xlu0 %4424, %v4500_v61   ;;  %v842_v2 = vadd.f32 %v4998_v50, %v4916_v15 }
 0xd84   : > { %1321 = vperm.xlu1 %4429, %v4855_v63  }
 0xd87   : > { %4428 = vset.pattern.permute.xlu0 %v4574_v59 }
 0xd88   : > { %1325 = vperm.xlu1 %4429, %v4877_v13   ;;  %1313 = vperm.xlu0 %4428, %v4877_v13  }
 0xd8c   : > { %4430 = vset.pattern.permute.xlu0 %v4576_v3  ;;  %4431 = vset.pattern.permute.xlu1 %v4576_v3 }
 0xd8d   : > { %1342 = vperm.xlu0 %4430, %v4855_v63   ;;  %1346 = vperm.xlu1 %4431, %v4877_v13  }
 0xdfe   : > { %v1297_v21 = vpop.permute.xlu1 %1296 }
 0xdff   : > { %v1304_v25 = vmul.f32 %v1297_v21, %v1209_v39  ;;  %v1305_v26 = vmul.f32 %v1297_v21, %v1210_v44  ;;  %v843_v21 = vadd.f32 %v4993_v47, %v4911_v14 }
 0xe01   : > { %v1316_v31 = vmul.f32 %v1310_v19, %v1304_v25  ;;  %v1317_v33 = vmul.f32 %v1310_v19, %v1305_v26  ;;  %v841_v19 = vadd.f32 %v4989_v40, %v4907_v6  ;;  %v840_v26 = vadd.f32 %v4991_v45, %v4909_v9 }
 0xe02   : > { %v1302_v30 = vpop.permute.xlu0 %1301  ;;  %v1123_v15 = vadd.f32 %v5054_v29, %v843_v21  ;;  %v4581_v29 = vmov 27  }
 0xe03   : > { %v1322_v28 = vpop.permute.xlu1 %1321  ;;  %v1306_v34 = vmul.f32 %v1302_v30, %v1211_v54  ;;  %v1307_v36 = vmul.f32 %v1302_v30, %v1212_v55  ;;  %v4476_v54 = vld [vmem:[%s5482_s1 + $0x18] sm:$0xff]   ;;  %v4577_v55 = vmov 24   ;;  %v1122_v30 = vadd.f32 %v5059_v27, %v842_v2 }
 0xe04   : > { %v1328_v46 = vadd.f32 %v1322_v28, %v1316_v31  ;;  %v1329_v51 = vadd.f32 %v1322_v28, %v1317_v33  ;;  %4432 = vset.pattern.permute.xlu1 %v4577_v55  ;;  %4433 = vset.pattern.permute.xlu0 %v4577_v55  ;;  %v1120_v6 = vadd.f32 %v5052_v22, %v840_v26  ;;  %v5154_v22 = vld [vmem:[%s5483_s2] sm:$0xff]  ;;  %v4582_v27 = vmov 28  }
 0xe05   : > { %1410 = vperm.xlu1 %4432, %v4855_v63   ;;  %1414 = vperm.xlu0 %4433, %v4877_v13  }
 0xe06   : > { %v1332_v0 = vmax.f32 %v1328_v46, 0.0  ;;  %v1333_v1 = vmax.f32 %v1329_v51, 0.0 }
 0xe07   : > { %v1314_v37 = vpop.permute.xlu0 %1313  ;;  %v1326_v58 = vpop.permute.xlu1 %1325 }
 0xe08   : > { %v1318_v53 = vmul.f32 %v1314_v37, %v1306_v34  ;;  %v1319_v57 = vmul.f32 %v1314_v37, %v1307_v36  ;;  %v1121_v34 = vadd.f32 %v5050_v20, %v841_v19  ;;  %v4477_v20 = vld [vmem:[%s5482_s1 + $0x40] sm:$0xff]   ;;  %v5162_v37 = vld [vmem:[%s5483_s2 + $0x8] sm:$0xff] }
 0xe09   : > { %4434 = vset.pattern.permute.xlu1 %v4578_v8  ;;  %4435 = vset.pattern.permute.xlu0 %v4579_v10 }
 0xe0a   : > { %v1330_v59 = vadd.f32 %v1326_v58, %v1318_v53  ;;  %v1331_v62 = vadd.f32 %v1326_v58, %v1319_v57  ;;  %1469 = vperm.xlu1 %4434, %v4855_v63   ;;  %1481 = vperm.xlu0 %4435, %v4855_v63  }
 0xe0c   : > { %v1334_v4 = vmax.f32 %v1330_v59, 0.0  ;;  %v1335_v5 = vmax.f32 %v1331_v62, 0.0  ;;  %v1343_v16 = vpop.permute.xlu0 %1342  ;;  %v1347_v61 = vpop.permute.xlu1 %1346 }
 0xe0e   : > { %v1339_v39 = vpack.c.bf16 %v1334_v4, %v1332_v0  ;;  %v1340_v44 = vpack.c.bf16 %v1335_v5, %v1333_v1  ;;  %1473 = vperm.xlu1 %4434, %v4877_v13   ;;  %1670 = vrot.lane.b32.xlu0 %v4877_v13, %s4580_s16 }
 0xe0f   : > { %4438 = vset.pattern.permute.xlu0 %v4582_v27 }
 0xe10   : > { %1357 = vmatprep.subr.bf16.mxu1 %v1340_v44 }
 0xe11   : > { %1358 = vmatpush1.bf16.msra.mxu1 %v1339_v39 }
 0xe12   : > { %4436 = vset.pattern.permute.xlu1 %v4579_v10  ;;  %1720 = vrot.lane.b32.xlu0 %v5162_v37, %s4583_s17 }
 0xe13   : > { %1485 = vperm.xlu1 %4436, %v4877_v13   ;;  %v4588_v13 = vmov 29  }
 0xe14   : > { %3089 = vmatmul.mubr.msk.bf16.vlgmr.msra.gmra.mrb[20].mxu1 %vm517_vm0, %v4476_v54 }
 0xe15   : > { %1549 = vmatprep.mubr.bf16.mxu1 %v4565_v56 }
 0xe16   : > { %1728 = vrot.lane.b32.xlu0 %v5162_v37, %s4584_s26 }
 0xe17   : > { %1668 = vrot.lane.b32.xlu1 %v5154_v22, %s4580_s16 }
 0xe18   : > { %4437 = vset.pattern.permute.xlu1 %v4581_v29 }
 0xe1a   : > { %1795 = vrot.lane.b32.xlu0 %v5154_v22, %s4586_s28 }
 0xe1b   : > { %1718 = vrot.lane.b32.xlu1 %v5154_v22, %s4583_s17 }
 0xe1e   : > { %1803 = vrot.lane.b32.xlu0 %v5154_v22, %s4587_s29 }
 0xe1f   : > { %1726 = vrot.lane.b32.xlu1 %v5154_v22, %s4584_s26 }
 0xe22   : > { %1805 = vrot.lane.b32.xlu0 %v5162_v37, %s4587_s29 }
 0xe23   : > { %1745 = vrot.lane.b32.xlu1 %v5154_v22, %s4585_s27 }
 0xe26   : > { %1561 = vperm.xlu0 %4438, %v5154_v22  }
 0xe27   : > { %1747 = vrot.lane.b32.xlu1 %v5162_v37, %s4585_s27 }
 0xe2a   : > { %1565 = vperm.xlu0 %4438, %v5162_v37  }
 0xe2b   : > { %1797 = vrot.lane.b32.xlu1 %v5162_v37, %s4586_s28 }
 0xe2e   : > { %4440 = vset.pattern.permute.xlu0 %v4588_v13 }
 0xe2f   : > { %1502 = vperm.xlu1 %4437, %v5154_v22   ;;  %1577 = vperm.xlu0 %4440, %v5162_v37  }
 0xe33   : > { %1506 = vperm.xlu1 %4437, %v5162_v37   ;;  %4442 = vset.pattern.permute.xlu0 %v4565_v56 }
 0xe37   : > { %4439 = vset.pattern.permute.xlu1 %v4588_v13 }
 0xe38   : > { %1573 = vperm.xlu1 %4439, %v5154_v22  }
 0xe3c   : > { %4441 = vset.pattern.permute.xlu1 %v4565_v56 }
 0xe84   : > { %v1411_v46 = vpop.permute.xlu1 %1410  ;;  %v1415_v53 = vpop.permute.xlu0 %1414 }
 0xe89   : > { %v1470_v51 = vpop.permute.xlu1 %1469  ;;  %v1482_v4 = vpop.permute.xlu0 %1481 }
 0xe8d   : > { %v1474_v57 = vpop.permute.xlu1 %1473 }
 0xe92   : > { %v1486_v8 = vpop.permute.xlu1 %1485 }
 0xee7   : > { %v1391_v60 = vpop.f32.mrb[20].mxu1 }
 0xee8   : > { %v1393_v3 = vpop.f32.mrb[21].mxu1  ;;  %v1392_v28 = vadd.f32 %v1391_v60, %v1343_v16 }
 0xee9   : > { %v1394_v25 = vadd.f32 %v1393_v3, %v1343_v16  ;;  %v1395_v63 = vpop.f32.mrb[22].mxu1 }
 0xeea   : > { %v1396_v31 = vadd.f32 %v1395_v63, %v1347_v61  ;;  %v1397_v33 = vpop.f32.mrb[23].mxu1  ;;  %v5104_v36 = vadd.f32 %v1392_v28, %v1120_v6  ;;  %v4478_v28 = vld [vmem:[%s5482_s1 + $0x48] sm:$0xff]  }
 0xeeb   : > { %v1398_v50 = vadd.f32 %v1397_v33, %v1347_v61  ;;  %v5100_v14 = vadd.f32 %v1394_v25, %v1121_v34 }
 0xeec   : > { %v5098_v40 = vadd.f32 %v1396_v31, %v1122_v30  ;;  %v4589_v31 = vmov 0.0  }
 0xeed   : > { %v5102_v47 = vadd.f32 %v1398_v50, %v1123_v15 }
 0xeee   : > { %v1407_v45 = vpack.c.bf16 %v5098_v40, %v5104_v36 }
 0xeef   : > { %v1408_v9 = vpack.c.bf16 %v5102_v47, %v5100_v14 }
 0xef1   : > { %1425 = vmatprep.subr.bf16.mxu0 %v1408_v9 }
 0xef2   : > { %1426 = vmatpush1.bf16.msra.mxu0 %v1407_v45 }
 0xef3   : > { %4052 = vmatprep.subr.bf16.mxu0 %v4684_v7 }
 0xef5   : > { %3093 = vmatmul.mubr.msk.bf16.vlgmr.msra.gmra.mrb[24].mxu0 %vm517_vm0, %v4477_v20  ;;  %v4479_v20 = vld [vmem:[%s5482_s1 + $0x50] sm:$0xff]  }
 0xef6   : > { %4054 = vmatpush3.bf16.msra.mxu0 %v4696_v11  ;;  %1648 = vmatprep.mubr.f32.mxu0 %v5100_v14 }
 0xef7   : > { %4056 = vmatprep.subr.bf16.mxu0 %v4698_v12 }
 0xefa   : > { %4058 = vmatpush3.bf16.msra.mxu0 %v4715_v17 }
 0xefb   : > { %4060 = vmatprep.subr.bf16.mxu0 %v4721_v18 }
 0xefe   : > { %4062 = vmatpush3.bf16.msra.mxu0 %v4737_v23 }
 0xeff   : > { %4064 = vmatprep.subr.bf16.mxu0 %v4741_v24 }
 0xf02   : > { %4066 = vmatpush3.bf16.msra.mxu0 %v4770_v32 }
 0xf03   : > { %4068 = vmatprep.subr.bf16.mxu0 %v4780_v35 }
 0xf06   : > { %4070 = vmatpush3.bf16.msra.mxu0 %v4790_v38 }
 0xf07   : > { %4072 = vmatprep.subr.bf16.mxu0 %v4800_v41 }
 0xf0a   : > { %4074 = vmatpush3.bf16.msra.mxu0 %v4804_v42 }
 0xf0b   : > { %4076 = vmatprep.subr.bf16.mxu0 %v4808_v43 }
 0xf0e   : > { %4078 = vmatpush3.bf16.msra.mxu0 %v4824_v48 }
 0xf0f   : > { %4080 = vmatprep.subr.bf16.mxu0 %v4828_v49 }
 0xf12   : > { %4082 = vmatpush3.bf16.msra.mxu0 %v4838_v52 }
 0xf13   : > { %4116 = vmatprep.subr.bf16.mxu0 %v4684_v7 }
 0xf15   : > { %1649 = vmatmul.mubr.f32.vlgmr.msra.gmra.mrb[28].mxu0 %v5104_v36 }
 0xf16   : > { %1653 = vmatprep.mubr.f32.mxu0 %v5102_v47  ;;  %4118 = vmatpush3.bf16.msra.mxu0 %v4696_v11 }
 0xf17   : > { %4120 = vmatprep.subr.bf16.mxu0 %v4698_v12 }
 0xf19   : > { %1654 = vmatmul.mubr.f32.gmra.mrb[30].mxu0 %v5098_v40 }
 0xf1a   : > { %4122 = vmatpush3.bf16.msra.mxu0 %v4715_v17 }
 0xf1b   : > { %4124 = vmatprep.subr.bf16.mxu0 %v4721_v18 }
 0xf1e   : > { %4126 = vmatpush3.bf16.msra.mxu0 %v4737_v23 }
 0xf1f   : > { %4128 = vmatprep.subr.bf16.mxu0 %v4741_v24 }
 0xf22   : > { %4130 = vmatpush3.bf16.msra.mxu0 %v4770_v32 }
 0xf23   : > { %4132 = vmatprep.subr.bf16.mxu0 %v4780_v35 }
 0xf26   : > { %4134 = vmatpush3.bf16.msra.mxu0 %v4790_v38 }
 0xf27   : > { %4136 = vmatprep.subr.bf16.mxu0 %v4800_v41 }
 0xf2a   : > { %4138 = vmatpush3.bf16.msra.mxu0 %v4804_v42 }
 0xf2b   : > { %4140 = vmatprep.subr.bf16.mxu0 %v4808_v43 }
 0xf2e   : > { %4142 = vmatpush3.bf16.msra.mxu0 %v4824_v48 }
 0xf2f   : > { %4144 = vmatprep.subr.bf16.mxu0 %v4828_v49 }
 0xf32   : > { %4146 = vmatpush3.bf16.msra.mxu0 %v4838_v52 }
 0xf33   : > { %4180 = vmatprep.subr.bf16.mxu0 %v4684_v7 }
 0xfc8   : > { %v1459_v58 = vpop.f32.mrb[24].mxu0 }
 0xfc9   : > { %v1460_v59 = vadd.f32 %v1459_v58, %v1411_v46  ;;  %v1461_v62 = vpop.f32.mrb[25].mxu0 }
 0xfca   : > { %v1462_v0 = vadd.f32 %v1461_v62, %v1411_v46  ;;  %v1463_v1 = vpop.f32.mrb[26].mxu0 }
 0xfcb   : > { %v1476_v5 = vmul.f32 %v1470_v51, %v1460_v59  ;;  %v1464_v39 = vadd.f32 %v1463_v1, %v1415_v53  ;;  %v1465_v44 = vpop.f32.mrb[27].mxu0 }
 0xfcc   : > { %v1477_v54 = vmul.f32 %v1470_v51, %v1462_v0  ;;  %v1466_v55 = vadd.f32 %v1465_v44, %v1415_v53  ;;  %v1669_v51 = vpop.permute.xlu1 %1668  ;;  %v1671_v53 = vpop.permute.xlu0 %1670 }
 0xfcd   : > { %v1478_v10 = vmul.f32 %v1474_v57, %v1464_v39  ;;  %v1488_v16 = vadd.f32 %v1482_v4, %v1476_v5 }
 0xfce   : > { %v1479_v60 = vmul.f32 %v1474_v57, %v1466_v55  ;;  %v1489_v61 = vadd.f32 %v1482_v4, %v1477_v54 }
 0xfcf   : > { %v1492_v2 = vmax.f32 %v1488_v16, 0.0  ;;  %v1490_v3 = vadd.f32 %v1486_v8, %v1478_v10 }
 0xfd0   : > { %v1491_v19 = vadd.f32 %v1486_v8, %v1479_v60  ;;  %v1493_v25 = vmax.f32 %v1489_v61, 0.0  ;;  %v1719_v57 = vpop.permute.xlu1 %1718  ;;  %v1721_v58 = vpop.permute.xlu0 %1720 }
 0xfd1   : > { %v1494_v21 = vmax.f32 %v1490_v3, 0.0 }
 0xfd2   : > { %v1495_v63 = vmax.f32 %v1491_v19, 0.0 }
 0xfd3   : > { %v1499_v26 = vpack.c.bf16 %v1494_v21, %v1492_v2  ;;  %v4480_v2 = vld [vmem:[%s5482_s1 + $0x58] sm:$0xff]  }
 0xfd4   : > { %v1500_v30 = vpack.c.bf16 %v1495_v63, %v1493_v25  ;;  %v1727_v44 = vpop.permute.xlu1 %1726  ;;  %v1729_v8 = vpop.permute.xlu0 %1728 }
 0xfd6   : > { %1517 = vmatprep.subr.bf16.mxu1 %v1500_v30 }
 0xfd7   : > { %1518 = vmatpush1.bf16.msra.mxu1 %v1499_v26 }
 0xfd8   : > { %3783 = vmatprep.subr.bf16.mxu1 %v4589_v31  ;;  %v1746_v3 = vpop.permute.xlu1 %1745  ;;  %v1796_v19 = vpop.permute.xlu0 %1795 }
 0xfda   : > { %3097 = vmatmul.mubr.msk.bf16.vlgmr.msra.gmra.mrb[24].mxu1 %vm517_vm0, %v4478_v28 }
 0xfdb   : > { %3785 = vmatprep.mubr.msk.bf16.mxu1 %vm4590_vm1, %v4589_v31 }
 0xfdc   : > { %v1748_v21 = vpop.permute.xlu1 %1747  ;;  %v1804_v30 = vpop.permute.xlu0 %1803 }
 0xfe8   : > { %v3469_v33 = vpop.f32.mrb[28].mxu0 }
 0xfe9   : > { %v3470_v34 = vpop.f32.mrb[29].mxu0 }
 0xfea   : > { %v3471_v15 = vadd.f32 %v3470_v34, %v3469_v33 }
 0xfec   : > { %v3472_v50 = vpop.f32.mrb[30].mxu0 }
 0xfed   : > { %v3473_v6 = vpop.f32.mrb[31].mxu0 }
 0xfee   : > { %v3474_v9 = vadd.f32 %v3473_v6, %v3472_v50 }
 0xff0   : > { %v1662_v45 = vpack.c.bf16 %v3474_v9, %v3471_v15  ;;  %v1798_v15 = vpop.permute.xlu1 %1797  ;;  %v1806_v9 = vpop.permute.xlu0 %1805 }
 0xff2   : > { %3784 = vmatpush3.bf16.msra.mxu1 %v1662_v45 }
 0xff3   : > { %3789 = vmatprep.subr.bf16.mxu1 %v4589_v31 }
 0xff5   : > { %3786 = vmatmul.mubr.msk.bf16.vlgmr.msra.gmra.mrb[28].mxu1 %vm517_vm0, %v4479_v20  ;;  %v1503_v20 = vpop.permute.xlu1 %1502 }
 0xff6   : > { %3791 = vmatprep.mubr.msk.bf16.mxu1 %vm4590_vm1, %v4589_v31 }
0x10ad   : > { %v5189_v29 = vpop.f32.mrb[24].mxu1 }
0x10ae   : > { %v5191_v27 = vpop.f32.mrb[25].mxu1 }
0x10af   : > { %v5193_v13 = vpop.f32.mrb[26].mxu1 }
0x10b0   : > { %v5195_v46 = vpop.f32.mrb[27].mxu1 }
0x10c8   : > { %v1711_v59 = vpop.f32.mrb[28].mxu1 }
0x10c9   : > { %v1712_v62 = vadd.f32 %v1711_v59, %v1669_v51  ;;  %v3787_v0 = vpop.f32.mrb[29].mxu1  ;;  %v1562_v51 = vpop.permute.xlu0 %1561 }
0x10ca   : > { %v1714_v1 = vpop.f32.mrb[30].mxu1 }
0x10cb   : > { %v1724_v4 = vmul.f32 %v1719_v57, %v1712_v62  ;;  %v1715_v5 = vadd.f32 %v1714_v1, %v1671_v53  ;;  %v3788_v39 = vpop.f32.mrb[31].mxu1  ;;  %v1507_v53 = vpop.permute.xlu1 %1506  ;;  %v1552_v57 = vadd.f32 %v5189_v29, %v1503_v20 }
0x10cc   : > { %v1556_v1 = vadd.f32 %v5193_v13, %v1507_v53 }
0x10cd   : > { %v1732_v54 = vadd.f32 %v1727_v44, %v1724_v4  ;;  %v1725_v55 = vmul.f32 %v1721_v58, %v1715_v5  ;;  %v1554_v58 = vadd.f32 %v5191_v27, %v1503_v20  ;;  %v1566_v59 = vpop.permute.xlu0 %1565  ;;  %v1568_v62 = vmul.f32 %v1562_v51, %v1552_v57 }
0x10ce   : > { %v1558_v4 = vadd.f32 %v5195_v46, %v1507_v53  ;;  %v1570_v44 = vmul.f32 %v1566_v59, %v1556_v1 }
0x10cf   : > { %v1733_v10 = vadd.f32 %v1729_v8, %v1725_v55  ;;  %v1734_v16 = vmax.f32 %v1732_v54, 0.0  ;;  %v1569_v0 = vmul.f32 %v1562_v51, %v1554_v58  ;;  %v1574_v5 = vpop.permute.xlu1 %1573 }
0x10d0   : > { %v1571_v39 = vmul.f32 %v1566_v59, %v1558_v4  ;;  %v1580_v54 = vadd.f32 %v1574_v5, %v1568_v62 }
0x10d1   : > { %v1735_v60 = vmax.f32 %v1733_v10, 0.0  ;;  %v1581_v55 = vadd.f32 %v1574_v5, %v1569_v0  ;;  %v1578_v8 = vpop.permute.xlu0 %1577 }
0x10d2   : > { %v1583_v29 = vadd.f32 %v1578_v8, %v1571_v39 }
0x10d3   : > { %v1739_v61 = vpack.c.bf16 %v1735_v60, %v1734_v16 }
0x10d5   : > { %3790 = vmatpush3.bf16.msra.mxu1 %v1739_v61  ;;  %v1582_v61 = vadd.f32 %v1578_v8, %v1570_v44  ;;  %v4591_v8 = vmov 12  }
0x10d6   : > { %4084 = vmatprep.subr.bf16.mxu1 %v4684_v7 }
0x10d8   : > { %3792 = vmatmul.mubr.msk.bf16.vlgmr.msra.gmra.mrb[32].mxu1 %vm517_vm0, %v4480_v2 }
0x10d9   : > { %4086 = vmatpush3.bf16.msra.mxu1 %v4696_v11 }
0x10da   : > { %4088 = vmatprep.subr.bf16.mxu1 %v4698_v12 }
0x10dd   : > { %4090 = vmatpush3.bf16.msra.mxu1 %v4715_v17 }
0x10de   : > { %4092 = vmatprep.subr.bf16.mxu1 %v4721_v18 }
0x10e1   : > { %4094 = vmatpush3.bf16.msra.mxu1 %v4737_v23 }
0x10e2   : > { %4096 = vmatprep.subr.bf16.mxu1 %v4741_v24 }
0x10e5   : > { %4098 = vmatpush3.bf16.msra.mxu1 %v4770_v32 }
0x10e6   : > { %4100 = vmatprep.subr.bf16.mxu1 %v4780_v35 }
0x10e9   : > { %4102 = vmatpush3.bf16.msra.mxu1 %v4790_v38 }
0x10ea   : > { %4104 = vmatprep.subr.bf16.mxu1 %v4800_v41 }
0x10ed   : > { %4106 = vmatpush3.bf16.msra.mxu1 %v4804_v42 }
0x10ee   : > { %4108 = vmatprep.subr.bf16.mxu1 %v4808_v43 }
0x10f1   : > { %4110 = vmatpush3.bf16.msra.mxu1 %v4824_v48 }
0x10f2   : > { %4112 = vmatprep.subr.bf16.mxu1 %v4828_v49 }
0x10f5   : > { %4114 = vmatpush3.bf16.msra.mxu1 %v4838_v52 }
0x11ab   : > { %v1788_v25 = vpop.f32.mrb[32].mxu1 }
0x11ac   : > { %v1789_v63 = vadd.f32 %v1788_v25, %v1746_v3  ;;  %v3793_v26 = vpop.f32.mrb[33].mxu1 }
0x11ad   : > { %v1791_v28 = vpop.f32.mrb[34].mxu1 }
0x11ae   : > { %v1801_v31 = vmul.f32 %v1796_v19, %v1789_v63  ;;  %v1792_v33 = vadd.f32 %v1791_v28, %v1748_v21  ;;  %v3794_v34 = vpop.f32.mrb[35].mxu1 }
0x11b0   : > { %v1802_v50 = vmul.f32 %v1798_v15, %v1792_v33  ;;  %v1809_v6 = vadd.f32 %v1804_v30, %v1801_v31 }
0x11b2   : > { %1813 = vperm.xlu1 %4441, %v1809_v6   ;;  %v1810_v45 = vadd.f32 %v1806_v9, %v1802_v50 }
0x11b6   : > { %1818 = vperm.xlu1 %4441, %v1810_v45  }
0x1231   : > { %v1814_v10 = vpop.permute.xlu1 %1813 }
0x1232   : > { %v1821_v16 = vadd.f32 %v1814_v10, %v1580_v54  ;;  %v1822_v60 = vadd.f32 %v1814_v10, %v1581_v55  ;;  %v4592_v10 = vmov 13  }
0x1234   : > { %v3106_v2 = vmul.f32 -1.442695, %v1821_v16  ;;  %v3107_v27 = vmul.f32 -1.442695, %v1822_v60 }
0x1235   : > { %v1819_v3 = vpop.permute.xlu1 %1818 }
0x1236   : > { %4501 = vpow2.f32 %v3106_v2  ;;  %v1823_v19 = vadd.f32 %v1819_v3, %v1582_v61  ;;  %v1824_v21 = vadd.f32 %v1819_v3, %v1583_v29 }
0x1237   : > { %4503 = vpow2.f32 %v3107_v27 }
0x1238   : > { %v3108_v13 = vmul.f32 -1.442695, %v1823_v19  ;;  %v3109_v46 = vmul.f32 -1.442695, %v1824_v21 }
0x123a   : > { %4505 = vpow2.f32 %v3108_v13 }
0x123b   : > { %4507 = vpow2.f32 %v3109_v46  ;;  %v4593_v46 = vmov 14  }
0x1240   : > { %v4502_v25 = vpop.eup %4501 }
0x1241   : > { %v4504_v63 = vpop.eup %4503  ;;  %v1837_v26 = vadd.f32 1.0, %v4502_v25 }
0x1242   : > { %v1838_v30 = vadd.f32 1.0, %v4504_v63 }
0x1243   : > { %4509 = vrcp.f32 %v1837_v26 }
0x1244   : > { %v4506_v28 = vpop.eup %4505  ;;  %4511 = vrcp.f32 %v1838_v30 }
0x1245   : > { %v4508_v31 = vpop.eup %4507  ;;  %v1839_v33 = vadd.f32 1.0, %v4506_v28 }
0x1246   : > { %v1840_v34 = vadd.f32 1.0, %v4508_v31 }
0x1247   : > { %4513 = vrcp.f32 %v1839_v33 }
0x1248   : > { %4515 = vrcp.f32 %v1840_v34 }
0x124d   : > { %v4510_v15 = vpop.eup %4509 }
0x124e   : > { %v4512_v50 = vpop.eup %4511  ;;  %v1849_v6 = vmul.f32 %v4510_v15, %v5104_v36 }
0x124f   : > { %v1850_v9 = vmul.f32 %v4512_v50, %v5100_v14 }
0x1251   : > { %v4514_v45 = vpop.eup %4513  ;;  %1917 = vmatprep.mubr.f32.mxu1 %v1850_v9 }
0x1252   : > { %v4516_v20 = vpop.eup %4515  ;;  %1918 = vmatmul.mubr.f32.vlgmr.msra.gmra.mrb[36].mxu1 %v1849_v6  ;;  %v1851_v51 = vmul.f32 %v4514_v45, %v5098_v40 }
0x1253   : > { %v1852_v53 = vmul.f32 %v4516_v20, %v5102_v47 }
0x1255   : > { %1922 = vmatprep.mubr.f32.mxu1 %v1852_v53 }
0x1256   : > { %1923 = vmatmul.mubr.f32.gmra.mrb[38].mxu1 %v1851_v51 }
0x1257   : > { %2118 = vmatprep.mubr.bf16.mxu1 %v4565_v56 }
0x1325   : > { %v3511_v57 = vpop.f32.mrb[36].mxu1 }
0x1326   : > { %v3512_v58 = vpop.f32.mrb[37].mxu1 }
0x1327   : > { %v3513_v59 = vadd.f32 %v3512_v58, %v3511_v57 }
0x1329   : > { %v3514_v62 = vpop.f32.mrb[38].mxu1  ;;  %1930 = vperm.xlu1 %4441, %v3513_v59  }
0x132a   : > { %v3515_v36 = vpop.f32.mrb[39].mxu1 }
0x132b   : > { %v3516_v0 = vadd.f32 %v3515_v36, %v3514_v62 }
0x132d   : > { %1935 = vperm.xlu0 %4442, %v3516_v0   ;;  %4444 = vset.pattern.permute.xlu1 %v4591_v8 }
0x132e   : > { %2042 = vperm.xlu1 %4444, %v5162_v37  }
0x1331   : > { %4443 = vset.pattern.permute.xlu0 %v4591_v8 }
0x1332   : > { %2038 = vperm.xlu0 %4443, %v5154_v22   ;;  %4445 = vset.pattern.permute.xlu1 %v4565_v56 }
0x1336   : > { %4447 = vset.pattern.permute.xlu0 %v4592_v10 }
0x1337   : > { %2054 = vperm.xlu0 %4447, %v5162_v37  }
0x133b   : > { %4449 = vset.pattern.permute.xlu0 %v4565_v56 }
0x13a8   : > { %v1931_v14 = vpop.permute.xlu1 %1930 }
0x13a9   : > { %v5226_v1 = vsub.f32 %v1849_v6, %v1931_v14  ;;  %v5228_v4 = vsub.f32 %v1850_v9, %v1931_v14 }
0x13ab   : > { %v1942_v40 = vmul.f32 %v5226_v1, %v5226_v1  ;;  %v1943_v47 = vmul.f32 %v5228_v4, %v5228_v4 }
0x13ac   : > { %v1936_v5 = vpop.permute.xlu0 %1935 }
0x13ad   : > { %v1940_v39 = vsub.f32 %v1851_v51, %v1936_v5  ;;  %v1941_v44 = vsub.f32 %v1852_v53, %v1936_v5  ;;  %2010 = vmatprep.mubr.f32.mxu0 %v1943_v47  ;;  %v2043_v25 = vpop.permute.xlu1 %2042 }
0x13ae   : > { %2011 = vmatmul.mubr.f32.vlgmr.msra.gmra.mrb[32].mxu0 %v1942_v40 }
0x13af   : > { %v1944_v54 = vmul.f32 %v1940_v39, %v1940_v39  ;;  %v1945_v55 = vmul.f32 %v1941_v44, %v1941_v44  ;;  %4182 = vmatpush3.bf16.msra.mxu0 %v4696_v11 }
0x13b0   : > { %4184 = vmatprep.subr.bf16.mxu0 %v4698_v12 }
0x13b1   : > { %2015 = vmatprep.mubr.f32.mxu0 %v1945_v55  ;;  %v2039_v26 = vpop.permute.xlu0 %2038 }
0x13b2   : > { %2016 = vmatmul.mubr.f32.gmra.mrb[34].mxu0 %v1944_v54 }
0x13b3   : > { %4186 = vmatpush3.bf16.msra.mxu0 %v4715_v17 }
0x13b4   : > { %4188 = vmatprep.subr.bf16.mxu0 %v4721_v18 }
0x13b6   : > { %v2055_v15 = vpop.permute.xlu0 %2054 }
0x13b7   : > { %4190 = vmatpush3.bf16.msra.mxu0 %v4737_v23 }
0x13b8   : > { %4192 = vmatprep.subr.bf16.mxu0 %v4741_v24 }
0x13bb   : > { %4194 = vmatpush3.bf16.msra.mxu0 %v4770_v32 }
0x13bc   : > { %4196 = vmatprep.subr.bf16.mxu0 %v4780_v35 }
0x13bf   : > { %4198 = vmatpush3.bf16.msra.mxu0 %v4790_v38 }
0x13c0   : > { %4200 = vmatprep.subr.bf16.mxu0 %v4800_v41 }
0x13c3   : > { %4202 = vmatpush3.bf16.msra.mxu0 %v4804_v42 }
0x13c4   : > { %4204 = vmatprep.subr.bf16.mxu0 %v4808_v43 }
0x13c7   : > { %4206 = vmatpush3.bf16.msra.mxu0 %v4824_v48 }
0x13c8   : > { %4208 = vmatprep.subr.bf16.mxu0 %v4828_v49 }
0x13cb   : > { %4210 = vmatpush3.bf16.msra.mxu0 %v4838_v52 }
0x13cc   : > { %4212 = vmatprep.subr.bf16.mxu0 %v4684_v7 }
0x1481   : > { %v3549_v16 = vpop.f32.mrb[32].mxu0 }
0x1482   : > { %v3550_v60 = vpop.f32.mrb[33].mxu0 }
0x1483   : > { %v3551_v61 = vadd.f32 %v3550_v60, %v3549_v16 }
0x1485   : > { %v2013_v29 = vadd.f32 0.001, %v3551_v61  ;;  %v3552_v2 = vpop.f32.mrb[34].mxu0 }
0x1486   : > { %v3553_v27 = vpop.f32.mrb[35].mxu0 }
0x1487   : > { %4517 = vrsqrt.f32 %v2013_v29  ;;  %v3554_v3 = vadd.f32 %v3553_v27, %v3552_v2 }
0x1489   : > { %v2018_v19 = vadd.f32 0.001, %v3554_v3 }
0x148b   : > { %4519 = vrsqrt.f32 %v2018_v19 }
0x1491   : > { %v4518_v21 = vpop.eup %4517 }
0x1492   : > { %2025 = vperm.xlu1 %4445, %v4518_v21  }
0x1495   : > { %v4520_v13 = vpop.eup %4519 }
0x1496   : > { %2030 = vperm.xlu1 %4445, %v4520_v13  }
0x149a   : > { %4446 = vset.pattern.permute.xlu1 %v4592_v10 }
0x149b   : > { %2050 = vperm.xlu1 %4446, %v5154_v22  }
0x149f   : > { %4448 = vset.pattern.permute.xlu1 %v4593_v46 }
0x14a0   : > { %2071 = vperm.xlu1 %4448, %v5154_v22  }
0x14a4   : > { %2075 = vperm.xlu1 %4448, %v5162_v37  }
0x14a8   : > { %4450 = vset.pattern.permute.xlu1 %v4565_v56 }
0x1511   : > { %v2026_v63 = vpop.permute.xlu1 %2025 }
0x1512   : > { %v2033_v30 = vmul.f32 %v2026_v63, %v5226_v1  ;;  %v2034_v28 = vmul.f32 %v2026_v63, %v5228_v4  ;;  %v4481_v4 = vld [vmem:[%s5482_s1 + $0x20] sm:$0xff]  }
0x1514   : > { %v2045_v9 = vmul.f32 %v2039_v26, %v2033_v30  ;;  %v2046_v45 = vmul.f32 %v2039_v26, %v2034_v28 }
0x1515   : > { %v2031_v31 = vpop.permute.xlu1 %2030 }
0x1516   : > { %v2035_v33 = vmul.f32 %v2031_v31, %v1940_v39  ;;  %v2036_v34 = vmul.f32 %v2031_v31, %v1941_v44 }
0x1518   : > { %v2047_v50 = vmul.f32 %v2043_v25, %v2035_v33  ;;  %v2048_v6 = vmul.f32 %v2043_v25, %v2036_v34  ;;  %v4594_v33 = vmov 15  }
0x151a   : > { %v2059_v20 = vadd.f32 %v2055_v15, %v2047_v50  ;;  %v2060_v51 = vadd.f32 %v2055_v15, %v2048_v6  ;;  %v2051_v53 = vpop.permute.xlu1 %2050 }
0x151b   : > { %v2057_v57 = vadd.f32 %v2051_v53, %v2045_v9  ;;  %v2058_v58 = vadd.f32 %v2051_v53, %v2046_v45 }
0x151c   : > { %v2063_v59 = vmax.f32 %v2059_v20, 0.0  ;;  %v2064_v62 = vmax.f32 %v2060_v51, 0.0 }
0x151d   : > { %v2061_v36 = vmax.f32 %v2057_v57, 0.0  ;;  %v2062_v0 = vmax.f32 %v2058_v58, 0.0  ;;  %v4595_v58 = vmov 16  }
0x151f   : > { %v2068_v14 = vpack.c.bf16 %v2063_v59, %v2061_v36  ;;  %v2069_v1 = vpack.c.bf16 %v2064_v62, %v2062_v0  ;;  %v2072_v40 = vpop.permute.xlu1 %2071  ;;  %v4596_v59 = vmov 17  }
0x1521   : > { %2086 = vmatprep.subr.bf16.mxu1 %v2069_v1 }
0x1522   : > { %2087 = vmatpush1.bf16.msra.mxu1 %v2068_v14 }
0x1523   : > { %4148 = vmatprep.subr.bf16.mxu1 %v4684_v7  ;;  %v2076_v55 = vpop.permute.xlu1 %2075 }
0x1525   : > { %3113 = vmatmul.mubr.msk.bf16.vlgmr.msra.gmra.mrb[40].mxu1 %vm517_vm0, %v4481_v4 }
0x1526   : > { %4150 = vmatpush3.bf16.msra.mxu1 %v4696_v11 }
0x1527   : > { %4152 = vmatprep.subr.bf16.mxu1 %v4698_v12 }
0x152a   : > { %4154 = vmatpush3.bf16.msra.mxu1 %v4715_v17 }
0x152b   : > { %4156 = vmatprep.subr.bf16.mxu1 %v4721_v18 }
0x152e   : > { %4158 = vmatpush3.bf16.msra.mxu1 %v4737_v23 }
0x152f   : > { %4160 = vmatprep.subr.bf16.mxu1 %v4741_v24 }
0x1532   : > { %4162 = vmatpush3.bf16.msra.mxu1 %v4770_v32 }
0x1533   : > { %4164 = vmatprep.subr.bf16.mxu1 %v4780_v35 }
0x1536   : > { %4166 = vmatpush3.bf16.msra.mxu1 %v4790_v38 }
0x1537   : > { %4168 = vmatprep.subr.bf16.mxu1 %v4800_v41 }
0x153a   : > { %4170 = vmatpush3.bf16.msra.mxu1 %v4804_v42 }
0x153b   : > { %4172 = vmatprep.subr.bf16.mxu1 %v4808_v43 }
0x153e   : > { %4174 = vmatpush3.bf16.msra.mxu1 %v4824_v48 }
0x153f   : > { %4176 = vmatprep.subr.bf16.mxu1 %v4828_v49 }
0x1542   : > { %4178 = vmatpush3.bf16.msra.mxu1 %v4838_v52 }
0x15f8   : > { %v2120_v47 = vpop.f32.mrb[40].mxu1 }
0x15f9   : > { %v2122_v5 = vpop.f32.mrb[41].mxu1  ;;  %v5283_v54 = vadd.f32 %v2120_v47, %v2072_v40 }
0x15fa   : > { %v5281_v39 = vadd.f32 %v2122_v5, %v2072_v40  ;;  %v2124_v44 = vpop.f32.mrb[42].mxu1 }
0x15fb   : > { %v2126_v8 = vpop.f32.mrb[43].mxu1  ;;  %v5290_v16 = vadd.f32 %v2124_v44, %v2076_v55 }
0x15fc   : > { %v5285_v10 = vadd.f32 %v2126_v8, %v2076_v55  ;;  %2193 = vmatprep.mubr.f32.mxu1 %v5281_v39 }
0x15fd   : > { %2194 = vmatmul.mubr.f32.vlgmr.msra.gmra.mrb[44].mxu1 %v5283_v54 }
0x15fe   : > { %2198 = vmatprep.mubr.f32.mxu1 %v5285_v10 }
0x1601   : > { %2199 = vmatmul.mubr.f32.gmra.mrb[46].mxu1 %v5290_v16 }
0x1602   : > { %2394 = vmatprep.mubr.bf16.mxu1 %v4565_v56 }
0x16d0   : > { %v3587_v60 = vpop.f32.mrb[44].mxu1 }
0x16d1   : > { %v3588_v61 = vpop.f32.mrb[45].mxu1 }
0x16d2   : > { %v3589_v29 = vadd.f32 %v3588_v61, %v3587_v60 }
0x16d4   : > { %2206 = vperm.xlu0 %4449, %v3589_v29   ;;  %v3590_v2 = vpop.f32.mrb[46].mxu1 }
0x16d5   : > { %v3591_v27 = vpop.f32.mrb[47].mxu1 }
0x16d6   : > { %v3592_v3 = vadd.f32 %v3591_v27, %v3590_v2 }
0x16d8   : > { %2211 = vperm.xlu1 %4450, %v3592_v3  }
0x16dc   : > { %4451 = vset.pattern.permute.xlu1 %v4594_v33 }
0x16dd   : > { %2314 = vperm.xlu1 %4451, %v5154_v22  }
0x16e1   : > { %4452 = vset.pattern.permute.xlu1 %v4565_v56 }
0x1753   : > { %v2207_v19 = vpop.permute.xlu0 %2206 }
0x1754   : > { %v2214_v21 = vsub.f32 %v5283_v54, %v2207_v19  ;;  %v2215_v13 = vsub.f32 %v5281_v39, %v2207_v19 }
0x1756   : > { %v2218_v46 = vmul.f32 %v2214_v21, %v2214_v21  ;;  %v2219_v25 = vmul.f32 %v2215_v13, %v2215_v13 }
0x1757   : > { %v2212_v63 = vpop.permute.xlu1 %2211 }
0x1758   : > { %v2216_v26 = vsub.f32 %v5290_v16, %v2212_v63  ;;  %v2217_v30 = vsub.f32 %v5285_v10, %v2212_v63  ;;  %2286 = vmatprep.mubr.f32.mxu0 %v2219_v25 }
0x1759   : > { %2287 = vmatmul.mubr.f32.vlgmr.msra.gmra.mrb[36].mxu0 %v2218_v46 }
0x175a   : > { %v2220_v28 = vmul.f32 %v2216_v26, %v2216_v26  ;;  %v2221_v31 = vmul.f32 %v2217_v30, %v2217_v30  ;;  %4214 = vmatpush3.bf16.msra.mxu0 %v4696_v11 }
0x175b   : > { %4216 = vmatprep.subr.bf16.mxu0 %v4698_v12 }
0x175c   : > { %2291 = vmatprep.mubr.f32.mxu0 %v2221_v31  ;;  %v2315_v62 = vpop.permute.xlu1 %2314 }
0x175d   : > { %2292 = vmatmul.mubr.f32.gmra.mrb[38].mxu0 %v2220_v28 }
0x175e   : > { %4218 = vmatpush3.bf16.msra.mxu0 %v4715_v17 }
0x175f   : > { %4220 = vmatprep.subr.bf16.mxu0 %v4721_v18 }
0x1762   : > { %4222 = vmatpush3.bf16.msra.mxu0 %v4737_v23 }
0x1763   : > { %4224 = vmatprep.subr.bf16.mxu0 %v4741_v24 }
0x1766   : > { %4226 = vmatpush3.bf16.msra.mxu0 %v4770_v32 }
0x1767   : > { %4228 = vmatprep.subr.bf16.mxu0 %v4780_v35 }
0x176a   : > { %4230 = vmatpush3.bf16.msra.mxu0 %v4790_v38 }
0x176b   : > { %4232 = vmatprep.subr.bf16.mxu0 %v4800_v41 }
0x176e   : > { %4234 = vmatpush3.bf16.msra.mxu0 %v4804_v42 }
0x176f   : > { %4236 = vmatprep.subr.bf16.mxu0 %v4808_v43 }
0x1772   : > { %4238 = vmatpush3.bf16.msra.mxu0 %v4824_v48 }
0x1773   : > { %4240 = vmatprep.subr.bf16.mxu0 %v4828_v49 }
0x1776   : > { %4242 = vmatpush3.bf16.msra.mxu0 %v4838_v52 }
0x182c   : > { %v3625_v34 = vpop.f32.mrb[36].mxu0 }
0x182d   : > { %v3626_v15 = vpop.f32.mrb[37].mxu0 }
0x182e   : > { %v3627_v50 = vadd.f32 %v3626_v15, %v3625_v34 }
0x1830   : > { %v2289_v6 = vadd.f32 0.001, %v3627_v50  ;;  %v3628_v9 = vpop.f32.mrb[38].mxu0 }
0x1831   : > { %v3629_v45 = vpop.f32.mrb[39].mxu0 }
0x1832   : > { %4521 = vrsqrt.f32 %v2289_v6  ;;  %v3630_v20 = vadd.f32 %v3629_v45, %v3628_v9 }
0x1834   : > { %v2294_v51 = vadd.f32 0.001, %v3630_v20 }
0x1836   : > { %4523 = vrsqrt.f32 %v2294_v51 }
0x183c   : > { %v4522_v53 = vpop.eup %4521 }
0x183d   : > { %2301 = vperm.xlu1 %4452, %v4522_v53  }
0x1840   : > { %v4524_v57 = vpop.eup %4523 }
0x1841   : > { %4454 = vset.pattern.permute.xlu1 %v4595_v58  ;;  %2306 = vperm.xlu0 %4449, %v4524_v57  }
0x1842   : > { %2326 = vperm.xlu1 %4454, %v5154_v22  }
0x1845   : > { %4453 = vset.pattern.permute.xlu0 %v4594_v33 }
0x1846   : > { %2330 = vperm.xlu1 %4454, %v5162_v37   ;;  %2318 = vperm.xlu0 %4453, %v5162_v37  }
0x184a   : > { %4455 = vset.pattern.permute.xlu0 %v4596_v59  ;;  %4456 = vset.pattern.permute.xlu1 %v4596_v59 }
0x184b   : > { %2347 = vperm.xlu0 %4455, %v5154_v22   ;;  %2351 = vperm.xlu1 %4456, %v5162_v37  }
0x184f   : > { %4457 = vset.pattern.permute.xlu1 %v4565_v56  ;;  %4458 = vset.pattern.permute.xlu0 %v4565_v56 }
0x18bc   : > { %v2302_v36 = vpop.permute.xlu1 %2301 }
0x18bd   : > { %v2309_v0 = vmul.f32 %v2302_v36, %v2214_v21  ;;  %v2310_v14 = vmul.f32 %v2302_v36, %v2215_v13 }
0x18bf   : > { %v2321_v40 = vmul.f32 %v2315_v62, %v2309_v0  ;;  %v2322_v47 = vmul.f32 %v2315_v62, %v2310_v14 }
0x18c0   : > { %v2307_v1 = vpop.permute.xlu0 %2306 }
0x18c1   : > { %v2327_v4 = vpop.permute.xlu1 %2326  ;;  %v2311_v5 = vmul.f32 %v2307_v1, %v2216_v26  ;;  %v2312_v44 = vmul.f32 %v2307_v1, %v2217_v30  ;;  %v4482_v26 = vld [vmem:[%s5482_s1 + $0x28] sm:$0xff]  }
0x18c2   : > { %v2333_v8 = vadd.f32 %v2327_v4, %v2321_v40  ;;  %v2334_v60 = vadd.f32 %v2327_v4, %v2322_v47 }
0x18c4   : > { %v2337_v19 = vmax.f32 %v2333_v8, 0.0  ;;  %v2338_v46 = vmax.f32 %v2334_v60, 0.0  ;;  %v4598_v8 = vmov 19  }
0x18c5   : > { %v2319_v55 = vpop.permute.xlu0 %2318  ;;  %v2331_v2 = vpop.permute.xlu1 %2330 }
0x18c6   : > { %v2323_v61 = vmul.f32 %v2319_v55, %v2311_v5  ;;  %v2324_v29 = vmul.f32 %v2319_v55, %v2312_v44  ;;  %v4597_v55 = vmov 18  }
0x18c8   : > { %v2335_v27 = vadd.f32 %v2331_v2, %v2323_v61  ;;  %v2336_v3 = vadd.f32 %v2331_v2, %v2324_v29 }
0x18ca   : > { %v2339_v25 = vmax.f32 %v2335_v27, 0.0  ;;  %v2340_v63 = vmax.f32 %v2336_v3, 0.0  ;;  %v2348_v30 = vpop.permute.xlu0 %2347  ;;  %v2352_v33 = vpop.permute.xlu1 %2351 }
0x18cc   : > { %v2344_v21 = vpack.c.bf16 %v2339_v25, %v2337_v19  ;;  %v2345_v13 = vpack.c.bf16 %v2340_v63, %v2338_v46  ;;  %v5391_v63 = vld [vmem:[%s5483_s2] sm:$0xff] }
0x18ce   : > { %2362 = vmatprep.subr.bf16.mxu1 %v2345_v13 }
0x18cf   : > { %2363 = vmatpush1.bf16.msra.mxu1 %v2344_v21  ;;  %v4599_v21 = vmov 20  }
0x18d0   : > { %4244 = vmatprep.subr.bf16.mxu1 %v4684_v7 }
0x18d2   : > { %3117 = vmatmul.mubr.msk.bf16.vlgmr.msra.gmra.mrb[48].mxu1 %vm517_vm0, %v4482_v26 }
0x18d3   : > { %4246 = vmatpush3.bf16.msra.mxu1 %v4696_v11 }
0x18d4   : > { %4248 = vmatprep.subr.bf16.mxu1 %v4698_v12 }
0x18d7   : > { %4250 = vmatpush3.bf16.msra.mxu1 %v4715_v17 }
0x18d8   : > { %4252 = vmatprep.subr.bf16.mxu1 %v4721_v18 }
0x18db   : > { %4254 = vmatpush3.bf16.msra.mxu1 %v4737_v23 }
0x18dc   : > { %4256 = vmatprep.subr.bf16.mxu1 %v4741_v24 }
0x18df   : > { %4258 = vmatpush3.bf16.msra.mxu1 %v4770_v32 }
0x18e0   : > { %4260 = vmatprep.subr.bf16.mxu1 %v4780_v35 }
0x18e3   : > { %4262 = vmatpush3.bf16.msra.mxu1 %v4790_v38 }
0x18e4   : > { %4264 = vmatprep.subr.bf16.mxu1 %v4800_v41 }
0x18e7   : > { %4266 = vmatpush3.bf16.msra.mxu1 %v4804_v42 }
0x18e8   : > { %4268 = vmatprep.subr.bf16.mxu1 %v4808_v43 }
0x18eb   : > { %4270 = vmatpush3.bf16.msra.mxu1 %v4824_v48 }
0x18ec   : > { %4272 = vmatprep.subr.bf16.mxu1 %v4828_v49 }
0x18ef   : > { %4274 = vmatpush3.bf16.msra.mxu1 %v4838_v52 }
0x18f0   : > { %4276 = vmatprep.subr.bf16.mxu1 %v4684_v7 }
0x19a5   : > { %v2396_v28 = vpop.f32.mrb[48].mxu1 }
0x19a6   : > { %v2398_v31 = vpop.f32.mrb[49].mxu1  ;;  %v5345_v50 = vadd.f32 %v2396_v28, %v2348_v30 }
0x19a7   : > { %v5343_v34 = vadd.f32 %v2398_v31, %v2348_v30  ;;  %v2400_v15 = vpop.f32.mrb[50].mxu1 }
0x19a8   : > { %v2402_v6 = vpop.f32.mrb[51].mxu1  ;;  %v5352_v45 = vadd.f32 %v2400_v15, %v2352_v33 }
0x19a9   : > { %v5347_v9 = vadd.f32 %v2402_v6, %v2352_v33  ;;  %2473 = vmatprep.mubr.f32.mxu0 %v5343_v34 }
0x19aa   : > { %2474 = vmatmul.mubr.f32.vlgmr.msra.gmra.mrb[40].mxu0 %v5345_v50 }
0x19ab   : > { %2478 = vmatprep.mubr.f32.mxu0 %v5347_v9 }
0x19ae   : > { %2479 = vmatmul.mubr.f32.gmra.mrb[42].mxu0 %v5352_v45 }
0x19af   : > { %2674 = vmatprep.mubr.bf16.mxu0 %v4565_v56 }
0x1a7d   : > { %v3663_v20 = vpop.f32.mrb[40].mxu0 }
0x1a7e   : > { %v3664_v51 = vpop.f32.mrb[41].mxu0 }
0x1a7f   : > { %v3665_v53 = vadd.f32 %v3664_v51, %v3663_v20 }
0x1a81   : > { %2486 = vperm.xlu1 %4457, %v3665_v53   ;;  %v3666_v57 = vpop.f32.mrb[42].mxu0 }
0x1a82   : > { %v3667_v58 = vpop.f32.mrb[43].mxu0 }
0x1a83   : > { %v3668_v59 = vadd.f32 %v3667_v58, %v3666_v57 }
0x1a85   : > { %2491 = vperm.xlu0 %4458, %v3668_v59   ;;  %4460 = vset.pattern.permute.xlu1 %v4597_v55 }
0x1a86   : > { %2598 = vperm.xlu1 %4460, %v5162_v37  }
0x1a89   : > { %4459 = vset.pattern.permute.xlu0 %v4597_v55 }
0x1a8a   : > { %2594 = vperm.xlu0 %4459, %v5154_v22   ;;  %4461 = vset.pattern.permute.xlu1 %v4565_v56 }
0x1a8e   : > { %4463 = vset.pattern.permute.xlu0 %v4598_v8 }
0x1a8f   : > { %2610 = vperm.xlu0 %4463, %v5162_v37  }
0x1a93   : > { %4465 = vset.pattern.permute.xlu0 %v4565_v56 }
0x1b00   : > { %v2487_v62 = vpop.permute.xlu1 %2486 }
0x1b01   : > { %v5357_v36 = vsub.f32 %v5345_v50, %v2487_v62  ;;  %v5360_v0 = vsub.f32 %v5343_v34, %v2487_v62 }
0x1b03   : > { %v2498_v14 = vmul.f32 %v5357_v36, %v5357_v36  ;;  %v2499_v1 = vmul.f32 %v5360_v0, %v5360_v0 }
0x1b04   : > { %v2492_v4 = vpop.permute.xlu0 %2491 }
0x1b05   : > { %v2496_v40 = vsub.f32 %v5352_v45, %v2492_v4  ;;  %v2497_v47 = vsub.f32 %v5347_v9, %v2492_v4  ;;  %2566 = vmatprep.mubr.f32.mxu1 %v2499_v1  ;;  %v2599_v13 = vpop.permute.xlu1 %2598 }
0x1b06   : > { %2567 = vmatmul.mubr.f32.vlgmr.msra.gmra.mrb[52].mxu1 %v2498_v14 }
0x1b07   : > { %v2500_v5 = vmul.f32 %v2496_v40, %v2496_v40  ;;  %v2501_v44 = vmul.f32 %v2497_v47, %v2497_v47  ;;  %4278 = vmatpush3.bf16.msra.mxu1 %v4696_v11 }
0x1b08   : > { %4280 = vmatprep.subr.bf16.mxu1 %v4698_v12 }
0x1b09   : > { %2571 = vmatprep.mubr.f32.mxu1 %v2501_v44  ;;  %v2595_v30 = vpop.permute.xlu0 %2594 }
0x1b0a   : > { %2572 = vmatmul.mubr.f32.gmra.mrb[54].mxu1 %v2500_v5 }
0x1b0b   : > { %4282 = vmatpush3.bf16.msra.mxu1 %v4715_v17 }
0x1b0c   : > { %4284 = vmatprep.subr.bf16.mxu1 %v4721_v18 }
0x1b0e   : > { %v2611_v20 = vpop.permute.xlu0 %2610 }
0x1b0f   : > { %4286 = vmatpush3.bf16.msra.mxu1 %v4737_v23 }
0x1b10   : > { %4288 = vmatprep.subr.bf16.mxu1 %v4741_v24 }
0x1b13   : > { %4290 = vmatpush3.bf16.msra.mxu1 %v4770_v32 }
0x1b14   : > { %4292 = vmatprep.subr.bf16.mxu1 %v4780_v35 }
0x1b17   : > { %4294 = vmatpush3.bf16.msra.mxu1 %v4790_v38 }
0x1b18   : > { %4296 = vmatprep.subr.bf16.mxu1 %v4800_v41 }
0x1b1b   : > { %4298 = vmatpush3.bf16.msra.mxu1 %v4804_v42 }
0x1b1c   : > { %4300 = vmatprep.subr.bf16.mxu1 %v4808_v43 }
0x1b1f   : > { %4302 = vmatpush3.bf16.msra.mxu1 %v4824_v48 }
0x1b20   : > { %4304 = vmatprep.subr.bf16.mxu1 %v4828_v49 }
0x1b23   : > { %4306 = vmatpush3.bf16.msra.mxu1 %v4838_v52 }
0x1bd9   : > { %v3701_v60 = vpop.f32.mrb[52].mxu1 }
0x1bda   : > { %v3702_v61 = vpop.f32.mrb[53].mxu1 }
0x1bdb   : > { %v3703_v29 = vadd.f32 %v3702_v61, %v3701_v60 }
0x1bdd   : > { %v2569_v2 = vadd.f32 0.001, %v3703_v29  ;;  %v3704_v27 = vpop.f32.mrb[54].mxu1 }
0x1bde   : > { %v3705_v3 = vpop.f32.mrb[55].mxu1 }
0x1bdf   : > { %4525 = vrsqrt.f32 %v2569_v2  ;;  %v3706_v19 = vadd.f32 %v3705_v3, %v3704_v27 }
0x1be1   : > { %v2574_v46 = vadd.f32 0.001, %v3706_v19 }
0x1be3   : > { %4527 = vrsqrt.f32 %v2574_v46 }
0x1be9   : > { %v4526_v25 = vpop.eup %4525 }
0x1bea   : > { %2581 = vperm.xlu1 %4461, %v4526_v25   ;;  %v4600_v25 = vmov 21  }
0x1bed   : > { %v4528_v22 = vpop.eup %4527 }
0x1bee   : > { %2586 = vperm.xlu1 %4461, %v4528_v22  }
0x1bf2   : > { %4462 = vset.pattern.permute.xlu1 %v4598_v8 }
0x1bf3   : > { %2606 = vperm.xlu1 %4462, %v5391_v63  }
0x1bf7   : > { %4464 = vset.pattern.permute.xlu1 %v4599_v21 }
0x1bf8   : > { %2627 = vperm.xlu1 %4464, %v5391_v63  }
0x1bfc   : > { %2631 = vperm.xlu1 %4464, %v5162_v37  }
0x1c00   : > { %4466 = vset.pattern.permute.xlu1 %v4565_v56 }
0x1c69   : > { %v2582_v26 = vpop.permute.xlu1 %2581 }
0x1c6a   : > { %v2589_v28 = vmul.f32 %v2582_v26, %v5357_v36  ;;  %v2590_v31 = vmul.f32 %v2582_v26, %v5360_v0  ;;  %v4483_v0 = vld [vmem:[%s5482_s1 + $0x30] sm:$0xff]  }
0x1c6c   : > { %v2601_v57 = vmul.f32 %v2595_v30, %v2589_v28  ;;  %v2602_v58 = vmul.f32 %v2595_v30, %v2590_v31 }
0x1c6d   : > { %v2587_v33 = vpop.permute.xlu1 %2586 }
0x1c6e   : > { %v2591_v15 = vmul.f32 %v2587_v33, %v2496_v40  ;;  %v2592_v6 = vmul.f32 %v2587_v33, %v2497_v47 }
0x1c70   : > { %v2603_v51 = vmul.f32 %v2599_v13, %v2591_v15  ;;  %v2604_v53 = vmul.f32 %v2599_v13, %v2592_v6 }
0x1c72   : > { %v2615_v59 = vadd.f32 %v2611_v20, %v2603_v51  ;;  %v2616_v62 = vadd.f32 %v2611_v20, %v2604_v53  ;;  %v2607_v37 = vpop.permute.xlu1 %2606  ;;  %v4601_v20 = vmov 22   ;;  %v4602_v51 = vmov 23  }
0x1c73   : > { %v2613_v14 = vadd.f32 %v2607_v37, %v2601_v57  ;;  %v2614_v1 = vadd.f32 %v2607_v37, %v2602_v58 }
0x1c74   : > { %v2619_v4 = vmax.f32 %v2615_v59, 0.0  ;;  %v2620_v5 = vmax.f32 %v2616_v62, 0.0 }
0x1c75   : > { %v2617_v44 = vmax.f32 %v2613_v14, 0.0  ;;  %v2618_v55 = vmax.f32 %v2614_v1, 0.0 }
0x1c77   : > { %v2624_v36 = vpack.c.bf16 %v2619_v4, %v2617_v44  ;;  %v2625_v8 = vpack.c.bf16 %v2620_v5, %v2618_v55 }
0x1c79   : > { %2642 = vmatprep.subr.bf16.mxu0 %v2625_v8 }
0x1c7a   : > { %2643 = vmatpush1.bf16.msra.mxu0 %v2624_v36 }
0x1c7b   : > { %4308 = vmatprep.subr.bf16.mxu0 %v4684_v7  ;;  %v2628_v7 = vpop.permute.xlu1 %2627 }
0x1c7d   : > { %3121 = vmatmul.mubr.msk.bf16.vlgmr.msra.gmra.mrb[44].mxu0 %vm517_vm0, %v4483_v0 }
0x1c7e   : > { %4310 = vmatpush3.bf16.msra.mxu0 %v4696_v11 }
0x1c7f   : > { %4312 = vmatprep.subr.bf16.mxu0 %v4698_v12 }
0x1c82   : > { %4314 = vmatpush3.bf16.msra.mxu0 %v4715_v17 }
0x1c83   : > { %4316 = vmatprep.subr.bf16.mxu0 %v4721_v18 }
0x1c86   : > { %4318 = vmatpush3.bf16.msra.mxu0 %v4737_v23 }
0x1c87   : > { %4320 = vmatprep.subr.bf16.mxu0 %v4741_v24  ;;  %v2632_v24 = vpop.permute.xlu1 %2631 }
0x1c8a   : > { %4322 = vmatpush3.bf16.msra.mxu0 %v4770_v32 }
0x1c8b   : > { %4324 = vmatprep.subr.bf16.mxu0 %v4780_v35 }
0x1c8e   : > { %4326 = vmatpush3.bf16.msra.mxu0 %v4790_v38 }
0x1c8f   : > { %4328 = vmatprep.subr.bf16.mxu0 %v4800_v41 }
0x1c92   : > { %4330 = vmatpush3.bf16.msra.mxu0 %v4804_v42 }
0x1c93   : > { %4332 = vmatprep.subr.bf16.mxu0 %v4808_v43 }
0x1c96   : > { %4334 = vmatpush3.bf16.msra.mxu0 %v4824_v48 }
0x1c97   : > { %4336 = vmatprep.subr.bf16.mxu0 %v4828_v49 }
0x1c9a   : > { %4338 = vmatpush3.bf16.msra.mxu0 %v4838_v52 }
0x1d50   : > { %v2676_v11 = vpop.f32.mrb[44].mxu0 }
0x1d51   : > { %v2678_v12 = vpop.f32.mrb[45].mxu0  ;;  %v5421_v23 = vadd.f32 %v2676_v11, %v2628_v7 }
0x1d52   : > { %v5419_v17 = vadd.f32 %v2678_v12, %v2628_v7  ;;  %v2680_v18 = vpop.f32.mrb[46].mxu0 }
0x1d53   : > { %v2682_v32 = vpop.f32.mrb[47].mxu0  ;;  %v5428_v38 = vadd.f32 %v2680_v18, %v2632_v24 }
0x1d54   : > { %v5423_v35 = vadd.f32 %v2682_v32, %v2632_v24  ;;  %2753 = vmatprep.mubr.f32.mxu1 %v5419_v17 }
0x1d55   : > { %2754 = vmatmul.mubr.f32.vlgmr.msra.gmra.mrb[56].mxu1 %v5421_v23 }
0x1d56   : > { %2758 = vmatprep.mubr.f32.mxu1 %v5423_v35 }
0x1d59   : > { %2759 = vmatmul.mubr.f32.gmra.mrb[58].mxu1 %v5428_v38 }
0x1d5a   : > { %2954 = vmatprep.mubr.bf16.mxu1 %v4565_v56 }
0x1e28   : > { %v3739_v41 = vpop.f32.mrb[56].mxu1 }
0x1e29   : > { %v3740_v42 = vpop.f32.mrb[57].mxu1 }
0x1e2a   : > { %v3741_v43 = vadd.f32 %v3740_v42, %v3739_v41 }
0x1e2c   : > { %2766 = vperm.xlu0 %4465, %v3741_v43   ;;  %v3742_v48 = vpop.f32.mrb[58].mxu1  ;;  %v4484_v43 = vld [vmem:[%s5482_s1 + $0x38] sm:$0xff]  }
0x1e2d   : > { %v3743_v49 = vpop.f32.mrb[59].mxu1 }
0x1e2e   : > { %v3744_v52 = vadd.f32 %v3743_v49, %v3742_v48  ;;  %v2405_v49 = vadd.f32 %v5345_v50, %v5283_v54 }
0x1e30   : > { %2771 = vperm.xlu1 %4466, %v3744_v52   ;;  %v2406_v52 = vadd.f32 %v5343_v34, %v5281_v39 }
0x1e34   : > { %4467 = vset.pattern.permute.xlu1 %v4600_v25 }
0x1e35   : > { %2874 = vperm.xlu1 %4467, %v5391_v63  }
0x1e39   : > { %4468 = vset.pattern.permute.xlu1 %v4565_v56  ;;  %v4536_v56 = vld [vmem:[%s5483_s2 + $0x8] sm:$0xff] }
0x1eab   : > { %v2767_v40 = vpop.permute.xlu0 %2766 }
0x1eac   : > { %v2774_v47 = vsub.f32 %v5421_v23, %v2767_v40  ;;  %v2775_v60 = vsub.f32 %v5419_v17, %v2767_v40 }
0x1eae   : > { %v2778_v61 = vmul.f32 %v2774_v47, %v2774_v47  ;;  %v2779_v29 = vmul.f32 %v2775_v60, %v2775_v60 }
0x1eaf   : > { %v2772_v2 = vpop.permute.xlu1 %2771 }
0x1eb0   : > { %v2776_v27 = vsub.f32 %v5428_v38, %v2772_v2  ;;  %v2777_v3 = vsub.f32 %v5423_v35, %v2772_v2  ;;  %2846 = vmatprep.mubr.f32.mxu0 %v2779_v29 }
0x1eb1   : > { %2847 = vmatmul.mubr.f32.vlgmr.msra.gmra.mrb[48].mxu0 %v2778_v61  ;;  %v2685_v61 = vadd.f32 %v5421_v23, %v2405_v49 }
0x1eb2   : > { %v2780_v19 = vmul.f32 %v2776_v27, %v2776_v27  ;;  %v2781_v46 = vmul.f32 %v2777_v3, %v2777_v3 }
0x1eb4   : > { %2851 = vmatprep.mubr.f32.mxu0 %v2781_v46  ;;  %v2875_v53 = vpop.permute.xlu1 %2874 }
0x1eb5   : > { %2852 = vmatmul.mubr.f32.gmra.mrb[50].mxu0 %v2780_v19 }
0x1f84   : > { %v3777_v22 = vpop.f32.mrb[48].mxu0 }
0x1f85   : > { %v3778_v21 = vpop.f32.mrb[49].mxu0 }
0x1f86   : > { %v3779_v13 = vadd.f32 %v3778_v21, %v3777_v22 }
0x1f88   : > { %v2849_v26 = vadd.f32 0.001, %v3779_v13  ;;  %v3780_v30 = vpop.f32.mrb[50].mxu0  ;;  %v4539_v13 = vld [vmem:[%s4757_s7 + $0x10] sm:$0xff] }
0x1f89   : > { %v3781_v28 = vpop.f32.mrb[51].mxu0 }
0x1f8a   : > { %4529 = vrsqrt.f32 %v2849_v26  ;;  %v3782_v31 = vadd.f32 %v3781_v28, %v3780_v30  ;;  %v4540_v30 = vld [vmem:[%s4757_s7 + $0x18] sm:$0xff] }
0x1f8c   : > { %v2854_v33 = vadd.f32 0.001, %v3782_v31 }
0x1f8e   : > { %4531 = vrsqrt.f32 %v2854_v33 }
0x1f94   : > { %v4530_v15 = vpop.eup %4529 }
0x1f95   : > { %2861 = vperm.xlu1 %4468, %v4530_v15  }
0x1f98   : > { %v4532_v6 = vpop.eup %4531 }
0x1f99   : > { %4470 = vset.pattern.permute.xlu1 %v4601_v20  ;;  %2866 = vperm.xlu0 %4465, %v4532_v6  }
0x1f9a   : > { %2886 = vperm.xlu1 %4470, %v5391_v63  }
0x1f9d   : > { %4469 = vset.pattern.permute.xlu0 %v4600_v25  ;;  %v4537_v25 = vld [vmem:[%s4757_s7] sm:$0xff] }
0x1f9e   : > { %2890 = vperm.xlu1 %4470, %v4536_v56   ;;  %2878 = vperm.xlu0 %4469, %v4536_v56  }
0x1fa2   : > { %4471 = vset.pattern.permute.xlu0 %v4602_v51  ;;  %4472 = vset.pattern.permute.xlu1 %v4602_v51 }
0x1fa3   : > { %2907 = vperm.xlu0 %4471, %v5391_v63   ;;  %2911 = vperm.xlu1 %4472, %v4536_v56  }
0x2014   : > { %v2862_v57 = vpop.permute.xlu1 %2861 }
0x2015   : > { %v2869_v58 = vmul.f32 %v2862_v57, %v2774_v47  ;;  %v2870_v59 = vmul.f32 %v2862_v57, %v2775_v60  ;;  %v2407_v60 = vadd.f32 %v5352_v45, %v5290_v16 }
0x2017   : > { %v2881_v14 = vmul.f32 %v2875_v53, %v2869_v58  ;;  %v2882_v1 = vmul.f32 %v2875_v53, %v2870_v59  ;;  %v2687_v34 = vadd.f32 %v5428_v38, %v2407_v60 }
0x2018   : > { %v2867_v62 = vpop.permute.xlu0 %2866 }
0x2019   : > { %v2887_v37 = vpop.permute.xlu1 %2886  ;;  %v2871_v4 = vmul.f32 %v2867_v62, %v2776_v27  ;;  %v2872_v5 = vmul.f32 %v2867_v62, %v2777_v3  ;;  %v2408_v27 = vadd.f32 %v5347_v9, %v5285_v10  ;;  %v2686_v3 = vadd.f32 %v5419_v17, %v2406_v52  ;;  %v4538_v10 = vld [vmem:[%s4757_s7 + $0x8] sm:$0xff] }
0x201a   : > { %v2893_v55 = vadd.f32 %v2887_v37, %v2881_v14  ;;  %v2894_v36 = vadd.f32 %v2887_v37, %v2882_v1 }
0x201b   : > { %v2688_v23 = vadd.f32 %v5423_v35, %v2408_v27 }
0x201c   : > { %v2897_v63 = vmax.f32 %v2893_v55, 0.0  ;;  %v2898_v18 = vmax.f32 %v2894_v36, 0.0 }
0x201d   : > { %v2879_v44 = vpop.permute.xlu0 %2878  ;;  %v2891_v7 = vpop.permute.xlu1 %2890 }
0x201e   : > { %v2883_v8 = vmul.f32 %v2879_v44, %v2871_v4  ;;  %v2884_v0 = vmul.f32 %v2879_v44, %v2872_v5 }
0x2020   : > { %v2895_v11 = vadd.f32 %v2891_v7, %v2883_v8  ;;  %v2896_v12 = vadd.f32 %v2891_v7, %v2884_v0 }
0x2022   : > { %v2899_v24 = vmax.f32 %v2895_v11, 0.0  ;;  %v2900_v32 = vmax.f32 %v2896_v12, 0.0  ;;  %v2908_v48 = vpop.permute.xlu0 %2907  ;;  %v2912_v47 = vpop.permute.xlu1 %2911 }
0x2024   : > { %v2904_v41 = vpack.c.bf16 %v2899_v24, %v2897_v63  ;;  %v2905_v42 = vpack.c.bf16 %v2900_v32, %v2898_v18 }
0x2026   : > { %2922 = vmatprep.subr.bf16.mxu1 %v2905_v42 }
0x2027   : > { %2923 = vmatpush1.bf16.msra.mxu1 %v2904_v41 }
0x202a   : > { %3125 = vmatmul.mubr.msk.bf16.vlgmr.msra.gmra.mrb[60].mxu1 %vm517_vm0, %v4484_v43 }
0x20fd   : > { %v2956_v40 = vpop.f32.mrb[60].mxu1 }
0x20fe   : > { %v2957_v29 = vadd.f32 %v2956_v40, %v2908_v48  ;;  %v2958_v2 = vpop.f32.mrb[61].mxu1 }
0x20ff   : > { %v2959_v54 = vadd.f32 %v2958_v2, %v2908_v48  ;;  %v2960_v50 = vpop.f32.mrb[62].mxu1 }
0x2100   : > { %v2965_v39 = vadd.f32 %v2957_v29, %v2685_v61  ;;  %v2961_v19 = vadd.f32 %v2960_v50, %v2912_v47  ;;  %v2962_v16 = vpop.f32.mrb[63].mxu1 }
0x2101   : > { %v2966_v45 = vadd.f32 %v2959_v54, %v2686_v3  ;;  %v2963_v46 = vadd.f32 %v2962_v16, %v2912_v47  ;;  %2983 = sbr.rel (!%p4663_p5) target bundleno = 8464 (0x2110), region = 67 }
0x2102   : > { %v2969_v22 = vadd.f32 %v4537_v25, %v2965_v39  ;;  %v2967_v21 = vadd.f32 %v2961_v19, %v2687_v34 }
0x2103   : > { %v2970_v9 = vadd.f32 %v4538_v10, %v2966_v45  ;;  %v2968_v17 = vadd.f32 %v2963_v46, %v2688_v23 }
0x2104   : > { %2973 = vst [vmem:[%s244_s30] sm:$0xff] %v2969_v22  ;;  %v2971_v26 = vadd.f32 %v4539_v13, %v2967_v21 }
0x2105   : > { %2974 = vst [vmem:[%s244_s30 + $0x8] sm:$0xff] %v2970_v9  ;;  %v2972_v38 = vadd.f32 %v4540_v30, %v2968_v17 }
0x2106   : > { %2975 = vst [vmem:[%s244_s30 + $0x10] sm:$0xff] %v2971_v26 }
0x2107   : > { %2976 = vst [vmem:[%s244_s30 + $0x18] sm:$0xff] %v2972_v38 }
0x210b   : > { %v2999_v35 = vld [vmem:[%s244_s30] sm:$0xff] }
0x210c   : > { %v3001_v28 = vld [vmem:[%s244_s30 + $0x8] sm:$0xff]  ;;  %3000 = vst [vmem:[%s2986_s9] sm:$0xff] %v2999_v35 }
0x210d   : > { %v3003_v31 = vld [vmem:[%s244_s30 + $0x10] sm:$0xff]  ;;  %3002 = vst [vmem:[%s2986_s9 + $0x8] sm:$0xff] %v3001_v28 }
0x210e   : > { %v3005_v33 = vld [vmem:[%s244_s30 + $0x18] sm:$0xff]  ;;  %3004 = vst [vmem:[%s2986_s9 + $0x20] sm:$0xff] %v3003_v31 }
0x210f   : > { %3006 = vst [vmem:[%s2986_s9 + $0x28] sm:$0xff] %v3005_v33 }
0x2110 PF: > { %p12_p10 = scmp.ge.s32.totalorder %s4650_s21, 4   ;;  %s5488_s18 = smov %s4559_s19 }
0x2111   : > { %s5489_s19 = smov %s4661_s24  ;;  %s5490_s20 = smov %s4650_s21 }
0x2112   :  { %14 = sbr.rel (!%p12_p10) target bundleno = 2 (0x2), region = 132 }

</bundles_post_ra>
